<compile_context>
chip_gen: v5e
topology: v5e:2x2
jax: 0.10.0
libtpu: 0.0.40
codegen_flags: <defaults>
</compile_context>

<pallas_src>
import numpy as np
import jax
import jax.numpy as jnp
from jax.experimental import pallas as pl
from jax.experimental.pallas import tpu as pltpu


# --------------------- bilinear 2x (align_corners=False) -------------------- #
def _bilinear2x_matrix_np(L):
    """(2L, L) matrix U with out = U @ in, matching
    nn.Upsample(scale_factor=2, mode='bilinear', align_corners=False) along one
    axis.  Entries are exact dyadics in {0, 0.25, 0.75, 1.0}."""
    o = np.arange(2 * L)
    src = (o + 0.5) / 2.0 - 0.5
    x0 = np.floor(src).astype(np.int64)
    lam = src - x0
    i0 = np.clip(x0, 0, L - 1)
    i1 = np.clip(x0 + 1, 0, L - 1)
    U = np.zeros((2 * L, L), dtype=np.float64)
    np.add.at(U, (o, i0), 1.0 - lam)
    np.add.at(U, (o, i1), lam)
    # Interpolation rows must sum to exactly 1.0: this is what makes the
    # conv/bias <-> upsample commutation used below exact.
    assert np.all(np.abs(U.sum(axis=1) - 1.0) < 1e-12)
    return U


def _composed_upsample_np(L, n_steps):
    """Exact composition of n_steps successive bilinear-2x upsamples along one
    axis: (L * 2**n_steps, L).  Entries are dyadic multiples of 2**-(2*n_steps)
    and exactly representable in float32."""
    U = np.eye(L, dtype=np.float64)
    for _ in range(n_steps):
        U = _bilinear2x_matrix_np(U.shape[0]) @ U
    assert np.all(np.abs(U.sum(axis=1) - 1.0) < 1e-9)
    return U


def bilinear2x_matrix(L):
    return jnp.asarray(_bilinear2x_matrix_np(L).astype(np.float32))


# ----------------------------- Pallas kernel -------------------------------- #
def _decoder_kernel(scal_ref, x_ref, uh_ref, uwt_ref, o_ref):
    """One batch element per grid program.

    scal_ref : (C+1,)  SMEM   [fused conv weights wf[0..C-1], fused bias bf]
    x_ref    : (1, C, H, W)   VMEM input block for this batch element
    uh_ref   : (16H, H)       VMEM composed bilinear operator along H
    uwt_ref  : (W, 16W)       VMEM composed bilinear operator along W (transposed)
    o_ref    : (1, 1, 16H, 16W) VMEM output block
    """
    C = x_ref.shape[1]

    # Fused 1x1-conv stack: z = sum_c wf[c] * x[c]   (C tiny VPU mul-adds,
    # scalars from SMEM; channels sliced from the ref so nothing large is
    # held live in vregs).
    z = x_ref[0, 0] * scal_ref[0]
    for c in range(1, C):
        z = z + x_ref[0, c] * scal_ref[c]

    # Composed, separable bilinear 16x upsampling (two small MXU matmuls).
    a = jnp.dot(uh_ref[...], z, preferred_element_type=jnp.float32)    # (16H, W)
    y = jnp.dot(a, uwt_ref[...], preferred_element_type=jnp.float32)   # (16H, 16W)

    # Fused bias: upsampling preserves constants (rows sum to 1), so adding it
    # once at the end is exactly equivalent to the per-layer biases.
    o_ref[0, 0] = (y + scal_ref[C]).astype(o_ref.dtype)


# ----------------------------- parameters ----------------------------------- #
def init_decoder_params(key, input_dim):
    c1 = input_dim // 2
    c2 = input_dim // 4
    ins = [input_dim, c1, c1, c2, c2]
    outs = [c1, c1, c2, c2, 1]
    params = []
    for ci, co in zip(ins, outs):
        key, kw, kb = jax.random.split(key, 3)
        bound = 1.0 / np.sqrt(ci)   # PyTorch Conv2d default init bound (k=1)
        w = jax.random.uniform(kw, (co, ci), jnp.float32, -bound, bound)
        b = jax.random.uniform(kb, (co,), jnp.float32, -bound, bound)
        params.append((w, b))
    return params


# ----------------- host-side precompute of fused operators ------------------ #
def build_decoder_operator(params, H, W):
    """Compose the 5 conv layers and the 4 bilinear-2x upsamples into
    batch-independent operators (exact in f64; all values fit f32)."""
    n_up = len(params) - 1

    wf = np.asarray(params[0][0], np.float64)       # (c1, C)
    bf = np.asarray(params[0][1], np.float64)       # (c1,)
    for w, b in params[1:]:
        w = np.asarray(w, np.float64)
        b = np.asarray(b, np.float64)
        bf = w @ bf + b
        wf = w @ wf
    assert wf.shape[0] == 1, "decoder must end in a single output channel"
    C = wf.shape[1]

    UH = _composed_upsample_np(H, n_up)             # (H*2**n_up, H)
    UWT = _composed_upsample_np(W, n_up).T          # (W, W*2**n_up)

    scal = np.concatenate([wf[0], bf]).astype(np.float32)   # (C+1,)
    return dict(
        scal=jnp.asarray(scal),
        UH=jnp.asarray(UH.astype(np.float32)),
        UWT=jnp.asarray(UWT.astype(np.float32)),
        C=C, H=H, W=W,
        H_out=H * 2 ** n_up, W_out=W * 2 ** n_up,
    )


# ------------------------------ forward -------------------------------------- #
def decoder_forward(x, op):
    """x: (N, C, H, W) float32 (NCHW, like PyTorch). Returns (N, 1, 16H, 16W)."""
    N, C, H, W = x.shape
    # Operators are batch-independent, but are built for a specific (C, H, W).
    assert (C, H, W) == (op["C"], op["H"], op["W"]), \
        "decoder operator was built for a different (C, H, W)"
    H_out, W_out = op["H_out"], op["W_out"]

    return pl.pallas_call(
        _decoder_kernel,
        grid=(N,),
        out_shape=jax.ShapeDtypeStruct((N, 1, H_out, W_out), jnp.float32),
        in_specs=[
            pl.BlockSpec(memory_space=pltpu.MemorySpace.SMEM),        # scal
            pl.BlockSpec((1, C, H, W), lambda n: (n, 0, 0, 0)),       # x
            pl.BlockSpec((H_out, H), lambda n: (0, 0)),               # UH
            pl.BlockSpec((W, W_out), lambda n: (0, 0)),               # UW^T
        ],
        out_specs=pl.BlockSpec((1, 1, H_out, W_out), lambda n: (n, 0, 0, 0)),
        compiler_params=pltpu.CompilerParams(
            dimension_semantics=("parallel",)),                       # v7x: 1 batch / core
    )(op["scal"], x, op["UH"], op["UWT"])


# ------------------------ pure-JAX reference (check) ------------------------- #
def decoder_reference(x, params):
    """Step-by-step conv -> upsample, mirroring the PyTorch module."""
    n = len(params)
    for i, (w, b) in enumerate(params):
        y = jnp.einsum("oc,nchw->nohw", w, x) + b[None, :, None, None]
        if i != n - 1:
            _, _, H, W = y.shape
            Uh = bilinear2x_matrix(H)
            Uw = bilinear2x_matrix(W)
            y = jnp.einsum("ph,nchw,qw->ncpq", Uh, y, Uw)
        x = y
    return x


if __name__ == "__main__":
    key = jax.random.PRNGKey(0)
    kp, kx = jax.random.split(key)

    input_dim = 32
    params = init_decoder_params(kp, input_dim)
    x = jax.random.normal(kx, (2, input_dim, 16, 16), jnp.float32)
    N, C, H, W = x.shape

    op = build_decoder_operator(params, H, W)     # one-time, batch-independent
    out = decoder_forward(x, op)
    out = jax.block_until_ready(out)

    assert out.shape == (2, 1, 256, 256), out.shape
    ref = decoder_reference(x, params)
    max_err = float(jnp.max(jnp.abs(out - ref)))
    assert jnp.allclose(out, ref, atol=1e-4, rtol=1e-4), max_err
    print("KERNEL_OK")
</pallas_src>

<mosaic_0001>
module attributes {stable_mosaic.version = 11 : i64} {
  func.func @_decoder_kernel(%arg0: i32, %arg1: memref<33xf32, #tpu.memory_space<smem>>, %arg2: memref<1x32x16x16xf32, #tpu.memory_space<vmem>>, %arg3: memref<256x16xf32, #tpu.memory_space<vmem>>, %arg4: memref<16x256xf32, #tpu.memory_space<vmem>>, %arg5: memref<1x1x256x256xf32, #tpu.memory_space<vmem>>) attributes {dimension_semantics = [#tpu.dimension_semantics<parallel>], iteration_bounds = array<i64: 2>, scalar_prefetch = 0 : i64, scratch_operands = 0 : i64, tpu.core_type = #tpu.core_type<tc>, window_params = [{transform_indices = @transform_0, window_bounds = array<i64: 33>}, {transform_indices = @transform_1, window_bounds = array<i64: 1, 32, 16, 16>}, {pipeline_mode = #tpu.pipeline_mode<synchronous>, transform_indices = @transform_2, window_bounds = array<i64: 256, 16>}, {pipeline_mode = #tpu.pipeline_mode<synchronous>, transform_indices = @transform_3, window_bounds = array<i64: 16, 256>}, {transform_indices = @transform_4, window_bounds = array<i64: 1, 1, 256, 256>}]} {
    %c0 = arith.constant 0 : index
    %c0_0 = arith.constant 0 : index
    %c0_1 = arith.constant 0 : index
    %c0_2 = arith.constant 0 : index
    %0 = vector.load %arg2[%c0, %c0_0, %c0_1, %c0_2] : memref<1x32x16x16xf32, #tpu.memory_space<vmem>>, vector<1x1x16x16xf32>
    %1 = vector.shape_cast %0 : vector<1x1x16x16xf32> to vector<16x16xf32>
    %c0_3 = arith.constant 0 : index
    %2 = memref.load %arg1[%c0_3] : memref<33xf32, #tpu.memory_space<smem>>
    %3 = vector.broadcast %2 : f32 to vector<16x16xf32>
    %4 = arith.mulf %1, %3 : vector<16x16xf32>
    %c0_4 = arith.constant 0 : index
    %c1 = arith.constant 1 : index
    %c0_5 = arith.constant 0 : index
    %c0_6 = arith.constant 0 : index
    %5 = vector.load %arg2[%c0_4, %c1, %c0_5, %c0_6] : memref<1x32x16x16xf32, #tpu.memory_space<vmem>>, vector<1x1x16x16xf32>
    %6 = vector.shape_cast %5 : vector<1x1x16x16xf32> to vector<16x16xf32>
    %c1_7 = arith.constant 1 : index
    %7 = memref.load %arg1[%c1_7] : memref<33xf32, #tpu.memory_space<smem>>
    %8 = vector.broadcast %7 : f32 to vector<16x16xf32>
    %9 = arith.mulf %6, %8 : vector<16x16xf32>
    %10 = arith.addf %4, %9 : vector<16x16xf32>
    %c0_8 = arith.constant 0 : index
    %c2 = arith.constant 2 : index
    %c0_9 = arith.constant 0 : index
    %c0_10 = arith.constant 0 : index
    %11 = vector.load %arg2[%c0_8, %c2, %c0_9, %c0_10] : memref<1x32x16x16xf32, #tpu.memory_space<vmem>>, vector<1x1x16x16xf32>
    %12 = vector.shape_cast %11 : vector<1x1x16x16xf32> to vector<16x16xf32>
    %c2_11 = arith.constant 2 : index
    %13 = memref.load %arg1[%c2_11] : memref<33xf32, #tpu.memory_space<smem>>
    %14 = vector.broadcast %13 : f32 to vector<16x16xf32>
    %15 = arith.mulf %12, %14 : vector<16x16xf32>
    %16 = arith.addf %10, %15 : vector<16x16xf32>
    %c0_12 = arith.constant 0 : index
    %c3 = arith.constant 3 : index
    %c0_13 = arith.constant 0 : index
    %c0_14 = arith.constant 0 : index
    %17 = vector.load %arg2[%c0_12, %c3, %c0_13, %c0_14] : memref<1x32x16x16xf32, #tpu.memory_space<vmem>>, vector<1x1x16x16xf32>
    %18 = vector.shape_cast %17 : vector<1x1x16x16xf32> to vector<16x16xf32>
    %c3_15 = arith.constant 3 : index
    %19 = memref.load %arg1[%c3_15] : memref<33xf32, #tpu.memory_space<smem>>
    %20 = vector.broadcast %19 : f32 to vector<16x16xf32>
    %21 = arith.mulf %18, %20 : vector<16x16xf32>
    %22 = arith.addf %16, %21 : vector<16x16xf32>
    %c0_16 = arith.constant 0 : index
    %c4 = arith.constant 4 : index
    %c0_17 = arith.constant 0 : index
    %c0_18 = arith.constant 0 : index
    %23 = vector.load %arg2[%c0_16, %c4, %c0_17, %c0_18] : memref<1x32x16x16xf32, #tpu.memory_space<vmem>>, vector<1x1x16x16xf32>
    %24 = vector.shape_cast %23 : vector<1x1x16x16xf32> to vector<16x16xf32>
    %c4_19 = arith.constant 4 : index
    %25 = memref.load %arg1[%c4_19] : memref<33xf32, #tpu.memory_space<smem>>
    %26 = vector.broadcast %25 : f32 to vector<16x16xf32>
    %27 = arith.mulf %24, %26 : vector<16x16xf32>
    %28 = arith.addf %22, %27 : vector<16x16xf32>
    %c0_20 = arith.constant 0 : index
    %c5 = arith.constant 5 : index
    %c0_21 = arith.constant 0 : index
    %c0_22 = arith.constant 0 : index
    %29 = vector.load %arg2[%c0_20, %c5, %c0_21, %c0_22] : memref<1x32x16x16xf32, #tpu.memory_space<vmem>>, vector<1x1x16x16xf32>
    %30 = vector.shape_cast %29 : vector<1x1x16x16xf32> to vector<16x16xf32>
    %c5_23 = arith.constant 5 : index
    %31 = memref.load %arg1[%c5_23] : memref<33xf32, #tpu.memory_space<smem>>
    %32 = vector.broadcast %31 : f32 to vector<16x16xf32>
    %33 = arith.mulf %30, %32 : vector<16x16xf32>
    %34 = arith.addf %28, %33 : vector<16x16xf32>
    %c0_24 = arith.constant 0 : index
    %c6 = arith.constant 6 : index
    %c0_25 = arith.constant 0 : index
    %c0_26 = arith.constant 0 : index
    %35 = vector.load %arg2[%c0_24, %c6, %c0_25, %c0_26] : memref<1x32x16x16xf32, #tpu.memory_space<vmem>>, vector<1x1x16x16xf32>
    %36 = vector.shape_cast %35 : vector<1x1x16x16xf32> to vector<16x16xf32>
    %c6_27 = arith.constant 6 : index
    %37 = memref.load %arg1[%c6_27] : memref<33xf32, #tpu.memory_space<smem>>
    %38 = vector.broadcast %37 : f32 to vector<16x16xf32>
    %39 = arith.mulf %36, %38 : vector<16x16xf32>
    %40 = arith.addf %34, %39 : vector<16x16xf32>
    %c0_28 = arith.constant 0 : index
    %c7 = arith.constant 7 : index
    %c0_29 = arith.constant 0 : index
    %c0_30 = arith.constant 0 : index
    %41 = vector.load %arg2[%c0_28, %c7, %c0_29, %c0_30] : memref<1x32x16x16xf32, #tpu.memory_space<vmem>>, vector<1x1x16x16xf32>
    %42 = vector.shape_cast %41 : vector<1x1x16x16xf32> to vector<16x16xf32>
    %c7_31 = arith.constant 7 : index
    %43 = memref.load %arg1[%c7_31] : memref<33xf32, #tpu.memory_space<smem>>
    %44 = vector.broadcast %43 : f32 to vector<16x16xf32>
    %45 = arith.mulf %42, %44 : vector<16x16xf32>
    %46 = arith.addf %40, %45 : vector<16x16xf32>
    %c0_32 = arith.constant 0 : index
    %c8 = arith.constant 8 : index
    %c0_33 = arith.constant 0 : index
    %c0_34 = arith.constant 0 : index
    %47 = vector.load %arg2[%c0_32, %c8, %c0_33, %c0_34] : memref<1x32x16x16xf32, #tpu.memory_space<vmem>>, vector<1x1x16x16xf32>
    %48 = vector.shape_cast %47 : vector<1x1x16x16xf32> to vector<16x16xf32>
    %c8_35 = arith.constant 8 : index
    %49 = memref.load %arg1[%c8_35] : memref<33xf32, #tpu.memory_space<smem>>
    %50 = vector.broadcast %49 : f32 to vector<16x16xf32>
    %51 = arith.mulf %48, %50 : vector<16x16xf32>
    %52 = arith.addf %46, %51 : vector<16x16xf32>
    %c0_36 = arith.constant 0 : index
    %c9 = arith.constant 9 : index
    %c0_37 = arith.constant 0 : index
    %c0_38 = arith.constant 0 : index
    %53 = vector.load %arg2[%c0_36, %c9, %c0_37, %c0_38] : memref<1x32x16x16xf32, #tpu.memory_space<vmem>>, vector<1x1x16x16xf32>
    %54 = vector.shape_cast %53 : vector<1x1x16x16xf32> to vector<16x16xf32>
    %c9_39 = arith.constant 9 : index
    %55 = memref.load %arg1[%c9_39] : memref<33xf32, #tpu.memory_space<smem>>
    %56 = vector.broadcast %55 : f32 to vector<16x16xf32>
    %57 = arith.mulf %54, %56 : vector<16x16xf32>
    %58 = arith.addf %52, %57 : vector<16x16xf32>
    %c0_40 = arith.constant 0 : index
    %c10 = arith.constant 10 : index
    %c0_41 = arith.constant 0 : index
    %c0_42 = arith.constant 0 : index
    %59 = vector.load %arg2[%c0_40, %c10, %c0_41, %c0_42] : memref<1x32x16x16xf32, #tpu.memory_space<vmem>>, vector<1x1x16x16xf32>
    %60 = vector.shape_cast %59 : vector<1x1x16x16xf32> to vector<16x16xf32>
    %c10_43 = arith.constant 10 : index
    %61 = memref.load %arg1[%c10_43] : memref<33xf32, #tpu.memory_space<smem>>
    %62 = vector.broadcast %61 : f32 to vector<16x16xf32>
    %63 = arith.mulf %60, %62 : vector<16x16xf32>
    %64 = arith.addf %58, %63 : vector<16x16xf32>
    %c0_44 = arith.constant 0 : index
    %c11 = arith.constant 11 : index
    %c0_45 = arith.constant 0 : index
    %c0_46 = arith.constant 0 : index
    %65 = vector.load %arg2[%c0_44, %c11, %c0_45, %c0_46] : memref<1x32x16x16xf32, #tpu.memory_space<vmem>>, vector<1x1x16x16xf32>
    %66 = vector.shape_cast %65 : vector<1x1x16x16xf32> to vector<16x16xf32>
    %c11_47 = arith.constant 11 : index
    %67 = memref.load %arg1[%c11_47] : memref<33xf32, #tpu.memory_space<smem>>
    %68 = vector.broadcast %67 : f32 to vector<16x16xf32>
    %69 = arith.mulf %66, %68 : vector<16x16xf32>
    %70 = arith.addf %64, %69 : vector<16x16xf32>
    %c0_48 = arith.constant 0 : index
    %c12 = arith.constant 12 : index
    %c0_49 = arith.constant 0 : index
    %c0_50 = arith.constant 0 : index
    %71 = vector.load %arg2[%c0_48, %c12, %c0_49, %c0_50] : memref<1x32x16x16xf32, #tpu.memory_space<vmem>>, vector<1x1x16x16xf32>
    %72 = vector.shape_cast %71 : vector<1x1x16x16xf32> to vector<16x16xf32>
    %c12_51 = arith.constant 12 : index
    %73 = memref.load %arg1[%c12_51] : memref<33xf32, #tpu.memory_space<smem>>
    %74 = vector.broadcast %73 : f32 to vector<16x16xf32>
    %75 = arith.mulf %72, %74 : vector<16x16xf32>
    %76 = arith.addf %70, %75 : vector<16x16xf32>
    %c0_52 = arith.constant 0 : index
    %c13 = arith.constant 13 : index
    %c0_53 = arith.constant 0 : index
    %c0_54 = arith.constant 0 : index
    %77 = vector.load %arg2[%c0_52, %c13, %c0_53, %c0_54] : memref<1x32x16x16xf32, #tpu.memory_space<vmem>>, vector<1x1x16x16xf32>
    %78 = vector.shape_cast %77 : vector<1x1x16x16xf32> to vector<16x16xf32>
    %c13_55 = arith.constant 13 : index
    %79 = memref.load %arg1[%c13_55] : memref<33xf32, #tpu.memory_space<smem>>
    %80 = vector.broadcast %79 : f32 to vector<16x16xf32>
    %81 = arith.mulf %78, %80 : vector<16x16xf32>
    %82 = arith.addf %76, %81 : vector<16x16xf32>
    %c0_56 = arith.constant 0 : index
    %c14 = arith.constant 14 : index
    %c0_57 = arith.constant 0 : index
    %c0_58 = arith.constant 0 : index
    %83 = vector.load %arg2[%c0_56, %c14, %c0_57, %c0_58] : memref<1x32x16x16xf32, #tpu.memory_space<vmem>>, vector<1x1x16x16xf32>
    %84 = vector.shape_cast %83 : vector<1x1x16x16xf32> to vector<16x16xf32>
    %c14_59 = arith.constant 14 : index
    %85 = memref.load %arg1[%c14_59] : memref<33xf32, #tpu.memory_space<smem>>
    %86 = vector.broadcast %85 : f32 to vector<16x16xf32>
    %87 = arith.mulf %84, %86 : vector<16x16xf32>
    %88 = arith.addf %82, %87 : vector<16x16xf32>
    %c0_60 = arith.constant 0 : index
    %c15 = arith.constant 15 : index
    %c0_61 = arith.constant 0 : index
    %c0_62 = arith.constant 0 : index
    %89 = vector.load %arg2[%c0_60, %c15, %c0_61, %c0_62] : memref<1x32x16x16xf32, #tpu.memory_space<vmem>>, vector<1x1x16x16xf32>
    %90 = vector.shape_cast %89 : vector<1x1x16x16xf32> to vector<16x16xf32>
    %c15_63 = arith.constant 15 : index
    %91 = memref.load %arg1[%c15_63] : memref<33xf32, #tpu.memory_space<smem>>
    %92 = vector.broadcast %91 : f32 to vector<16x16xf32>
    %93 = arith.mulf %90, %92 : vector<16x16xf32>
    %94 = arith.addf %88, %93 : vector<16x16xf32>
    %c0_64 = arith.constant 0 : index
    %c16 = arith.constant 16 : index
    %c0_65 = arith.constant 0 : index
    %c0_66 = arith.constant 0 : index
    %95 = vector.load %arg2[%c0_64, %c16, %c0_65, %c0_66] : memref<1x32x16x16xf32, #tpu.memory_space<vmem>>, vector<1x1x16x16xf32>
    %96 = vector.shape_cast %95 : vector<1x1x16x16xf32> to vector<16x16xf32>
    %c16_67 = arith.constant 16 : index
    %97 = memref.load %arg1[%c16_67] : memref<33xf32, #tpu.memory_space<smem>>
    %98 = vector.broadcast %97 : f32 to vector<16x16xf32>
    %99 = arith.mulf %96, %98 : vector<16x16xf32>
    %100 = arith.addf %94, %99 : vector<16x16xf32>
    %c0_68 = arith.constant 0 : index
    %c17 = arith.constant 17 : index
    %c0_69 = arith.constant 0 : index
    %c0_70 = arith.constant 0 : index
    %101 = vector.load %arg2[%c0_68, %c17, %c0_69, %c0_70] : memref<1x32x16x16xf32, #tpu.memory_space<vmem>>, vector<1x1x16x16xf32>
    %102 = vector.shape_cast %101 : vector<1x1x16x16xf32> to vector<16x16xf32>
    %c17_71 = arith.constant 17 : index
    %103 = memref.load %arg1[%c17_71] : memref<33xf32, #tpu.memory_space<smem>>
    %104 = vector.broadcast %103 : f32 to vector<16x16xf32>
    %105 = arith.mulf %102, %104 : vector<16x16xf32>
    %106 = arith.addf %100, %105 : vector<16x16xf32>
    %c0_72 = arith.constant 0 : index
    %c18 = arith.constant 18 : index
    %c0_73 = arith.constant 0 : index
    %c0_74 = arith.constant 0 : index
    %107 = vector.load %arg2[%c0_72, %c18, %c0_73, %c0_74] : memref<1x32x16x16xf32, #tpu.memory_space<vmem>>, vector<1x1x16x16xf32>
    %108 = vector.shape_cast %107 : vector<1x1x16x16xf32> to vector<16x16xf32>
    %c18_75 = arith.constant 18 : index
    %109 = memref.load %arg1[%c18_75] : memref<33xf32, #tpu.memory_space<smem>>
    %110 = vector.broadcast %109 : f32 to vector<16x16xf32>
    %111 = arith.mulf %108, %110 : vector<16x16xf32>
    %112 = arith.addf %106, %111 : vector<16x16xf32>
    %c0_76 = arith.constant 0 : index
    %c19 = arith.constant 19 : index
    %c0_77 = arith.constant 0 : index
    %c0_78 = arith.constant 0 : index
    %113 = vector.load %arg2[%c0_76, %c19, %c0_77, %c0_78] : memref<1x32x16x16xf32, #tpu.memory_space<vmem>>, vector<1x1x16x16xf32>
    %114 = vector.shape_cast %113 : vector<1x1x16x16xf32> to vector<16x16xf32>
    %c19_79 = arith.constant 19 : index
    %115 = memref.load %arg1[%c19_79] : memref<33xf32, #tpu.memory_space<smem>>
    %116 = vector.broadcast %115 : f32 to vector<16x16xf32>
    %117 = arith.mulf %114, %116 : vector<16x16xf32>
    %118 = arith.addf %112, %117 : vector<16x16xf32>
    %c0_80 = arith.constant 0 : index
    %c20 = arith.constant 20 : index
    %c0_81 = arith.constant 0 : index
    %c0_82 = arith.constant 0 : index
    %119 = vector.load %arg2[%c0_80, %c20, %c0_81, %c0_82] : memref<1x32x16x16xf32, #tpu.memory_space<vmem>>, vector<1x1x16x16xf32>
    %120 = vector.shape_cast %119 : vector<1x1x16x16xf32> to vector<16x16xf32>
    %c20_83 = arith.constant 20 : index
    %121 = memref.load %arg1[%c20_83] : memref<33xf32, #tpu.memory_space<smem>>
    %122 = vector.broadcast %121 : f32 to vector<16x16xf32>
    %123 = arith.mulf %120, %122 : vector<16x16xf32>
    %124 = arith.addf %118, %123 : vector<16x16xf32>
    %c0_84 = arith.constant 0 : index
    %c21 = arith.constant 21 : index
    %c0_85 = arith.constant 0 : index
    %c0_86 = arith.constant 0 : index
    %125 = vector.load %arg2[%c0_84, %c21, %c0_85, %c0_86] : memref<1x32x16x16xf32, #tpu.memory_space<vmem>>, vector<1x1x16x16xf32>
    %126 = vector.shape_cast %125 : vector<1x1x16x16xf32> to vector<16x16xf32>
    %c21_87 = arith.constant 21 : index
    %127 = memref.load %arg1[%c21_87] : memref<33xf32, #tpu.memory_space<smem>>
    %128 = vector.broadcast %127 : f32 to vector<16x16xf32>
    %129 = arith.mulf %126, %128 : vector<16x16xf32>
    %130 = arith.addf %124, %129 : vector<16x16xf32>
    %c0_88 = arith.constant 0 : index
    %c22 = arith.constant 22 : index
    %c0_89 = arith.constant 0 : index
    %c0_90 = arith.constant 0 : index
    %131 = vector.load %arg2[%c0_88, %c22, %c0_89, %c0_90] : memref<1x32x16x16xf32, #tpu.memory_space<vmem>>, vector<1x1x16x16xf32>
    %132 = vector.shape_cast %131 : vector<1x1x16x16xf32> to vector<16x16xf32>
    %c22_91 = arith.constant 22 : index
    %133 = memref.load %arg1[%c22_91] : memref<33xf32, #tpu.memory_space<smem>>
    %134 = vector.broadcast %133 : f32 to vector<16x16xf32>
    %135 = arith.mulf %132, %134 : vector<16x16xf32>
    %136 = arith.addf %130, %135 : vector<16x16xf32>
    %c0_92 = arith.constant 0 : index
    %c23 = arith.constant 23 : index
    %c0_93 = arith.constant 0 : index
    %c0_94 = arith.constant 0 : index
    %137 = vector.load %arg2[%c0_92, %c23, %c0_93, %c0_94] : memref<1x32x16x16xf32, #tpu.memory_space<vmem>>, vector<1x1x16x16xf32>
    %138 = vector.shape_cast %137 : vector<1x1x16x16xf32> to vector<16x16xf32>
    %c23_95 = arith.constant 23 : index
    %139 = memref.load %arg1[%c23_95] : memref<33xf32, #tpu.memory_space<smem>>
    %140 = vector.broadcast %139 : f32 to vector<16x16xf32>
    %141 = arith.mulf %138, %140 : vector<16x16xf32>
    %142 = arith.addf %136, %141 : vector<16x16xf32>
    %c0_96 = arith.constant 0 : index
    %c24 = arith.constant 24 : index
    %c0_97 = arith.constant 0 : index
    %c0_98 = arith.constant 0 : index
    %143 = vector.load %arg2[%c0_96, %c24, %c0_97, %c0_98] : memref<1x32x16x16xf32, #tpu.memory_space<vmem>>, vector<1x1x16x16xf32>
    %144 = vector.shape_cast %143 : vector<1x1x16x16xf32> to vector<16x16xf32>
    %c24_99 = arith.constant 24 : index
    %145 = memref.load %arg1[%c24_99] : memref<33xf32, #tpu.memory_space<smem>>
    %146 = vector.broadcast %145 : f32 to vector<16x16xf32>
    %147 = arith.mulf %144, %146 : vector<16x16xf32>
    %148 = arith.addf %142, %147 : vector<16x16xf32>
    %c0_100 = arith.constant 0 : index
    %c25 = arith.constant 25 : index
    %c0_101 = arith.constant 0 : index
    %c0_102 = arith.constant 0 : index
    %149 = vector.load %arg2[%c0_100, %c25, %c0_101, %c0_102] : memref<1x32x16x16xf32, #tpu.memory_space<vmem>>, vector<1x1x16x16xf32>
    %150 = vector.shape_cast %149 : vector<1x1x16x16xf32> to vector<16x16xf32>
    %c25_103 = arith.constant 25 : index
    %151 = memref.load %arg1[%c25_103] : memref<33xf32, #tpu.memory_space<smem>>
    %152 = vector.broadcast %151 : f32 to vector<16x16xf32>
    %153 = arith.mulf %150, %152 : vector<16x16xf32>
    %154 = arith.addf %148, %153 : vector<16x16xf32>
    %c0_104 = arith.constant 0 : index
    %c26 = arith.constant 26 : index
    %c0_105 = arith.constant 0 : index
    %c0_106 = arith.constant 0 : index
    %155 = vector.load %arg2[%c0_104, %c26, %c0_105, %c0_106] : memref<1x32x16x16xf32, #tpu.memory_space<vmem>>, vector<1x1x16x16xf32>
    %156 = vector.shape_cast %155 : vector<1x1x16x16xf32> to vector<16x16xf32>
    %c26_107 = arith.constant 26 : index
    %157 = memref.load %arg1[%c26_107] : memref<33xf32, #tpu.memory_space<smem>>
    %158 = vector.broadcast %157 : f32 to vector<16x16xf32>
    %159 = arith.mulf %156, %158 : vector<16x16xf32>
    %160 = arith.addf %154, %159 : vector<16x16xf32>
    %c0_108 = arith.constant 0 : index
    %c27 = arith.constant 27 : index
    %c0_109 = arith.constant 0 : index
    %c0_110 = arith.constant 0 : index
    %161 = vector.load %arg2[%c0_108, %c27, %c0_109, %c0_110] : memref<1x32x16x16xf32, #tpu.memory_space<vmem>>, vector<1x1x16x16xf32>
    %162 = vector.shape_cast %161 : vector<1x1x16x16xf32> to vector<16x16xf32>
    %c27_111 = arith.constant 27 : index
    %163 = memref.load %arg1[%c27_111] : memref<33xf32, #tpu.memory_space<smem>>
    %164 = vector.broadcast %163 : f32 to vector<16x16xf32>
    %165 = arith.mulf %162, %164 : vector<16x16xf32>
    %166 = arith.addf %160, %165 : vector<16x16xf32>
    %c0_112 = arith.constant 0 : index
    %c28 = arith.constant 28 : index
    %c0_113 = arith.constant 0 : index
    %c0_114 = arith.constant 0 : index
    %167 = vector.load %arg2[%c0_112, %c28, %c0_113, %c0_114] : memref<1x32x16x16xf32, #tpu.memory_space<vmem>>, vector<1x1x16x16xf32>
    %168 = vector.shape_cast %167 : vector<1x1x16x16xf32> to vector<16x16xf32>
    %c28_115 = arith.constant 28 : index
    %169 = memref.load %arg1[%c28_115] : memref<33xf32, #tpu.memory_space<smem>>
    %170 = vector.broadcast %169 : f32 to vector<16x16xf32>
    %171 = arith.mulf %168, %170 : vector<16x16xf32>
    %172 = arith.addf %166, %171 : vector<16x16xf32>
    %c0_116 = arith.constant 0 : index
    %c29 = arith.constant 29 : index
    %c0_117 = arith.constant 0 : index
    %c0_118 = arith.constant 0 : index
    %173 = vector.load %arg2[%c0_116, %c29, %c0_117, %c0_118] : memref<1x32x16x16xf32, #tpu.memory_space<vmem>>, vector<1x1x16x16xf32>
    %174 = vector.shape_cast %173 : vector<1x1x16x16xf32> to vector<16x16xf32>
    %c29_119 = arith.constant 29 : index
    %175 = memref.load %arg1[%c29_119] : memref<33xf32, #tpu.memory_space<smem>>
    %176 = vector.broadcast %175 : f32 to vector<16x16xf32>
    %177 = arith.mulf %174, %176 : vector<16x16xf32>
    %178 = arith.addf %172, %177 : vector<16x16xf32>
    %c0_120 = arith.constant 0 : index
    %c30 = arith.constant 30 : index
    %c0_121 = arith.constant 0 : index
    %c0_122 = arith.constant 0 : index
    %179 = vector.load %arg2[%c0_120, %c30, %c0_121, %c0_122] : memref<1x32x16x16xf32, #tpu.memory_space<vmem>>, vector<1x1x16x16xf32>
    %180 = vector.shape_cast %179 : vector<1x1x16x16xf32> to vector<16x16xf32>
    %c30_123 = arith.constant 30 : index
    %181 = memref.load %arg1[%c30_123] : memref<33xf32, #tpu.memory_space<smem>>
    %182 = vector.broadcast %181 : f32 to vector<16x16xf32>
    %183 = arith.mulf %180, %182 : vector<16x16xf32>
    %184 = arith.addf %178, %183 : vector<16x16xf32>
    %c0_124 = arith.constant 0 : index
    %c31 = arith.constant 31 : index
    %c0_125 = arith.constant 0 : index
    %c0_126 = arith.constant 0 : index
    %185 = vector.load %arg2[%c0_124, %c31, %c0_125, %c0_126] : memref<1x32x16x16xf32, #tpu.memory_space<vmem>>, vector<1x1x16x16xf32>
    %186 = vector.shape_cast %185 : vector<1x1x16x16xf32> to vector<16x16xf32>
    %c31_127 = arith.constant 31 : index
    %187 = memref.load %arg1[%c31_127] : memref<33xf32, #tpu.memory_space<smem>>
    %188 = vector.broadcast %187 : f32 to vector<16x16xf32>
    %189 = arith.mulf %186, %188 : vector<16x16xf32>
    %190 = arith.addf %184, %189 : vector<16x16xf32>
    %c0_128 = arith.constant 0 : index
    %c0_129 = arith.constant 0 : index
    %191 = vector.load %arg3[%c0_128, %c0_129] : memref<256x16xf32, #tpu.memory_space<vmem>>, vector<256x16xf32>
    %cst = arith.constant dense<0.000000e+00> : vector<256x16xf32>
    %192 = tpu.matmul %191, %190, %cst {dimension_numbers = #tpu.dot_dimension_numbers<[1], [0], [0], [1], [0, 0, 1, 1], [], []>} : vector<256x16xf32>, vector<16x16xf32>, vector<256x16xf32> -> vector<256x16xf32>
    %c0_130 = arith.constant 0 : index
    %c0_131 = arith.constant 0 : index
    %193 = vector.load %arg4[%c0_130, %c0_131] : memref<16x256xf32, #tpu.memory_space<vmem>>, vector<16x256xf32>
    %cst_132 = arith.constant dense<0.000000e+00> : vector<256x256xf32>
    %194 = tpu.matmul %192, %193, %cst_132 {dimension_numbers = #tpu.dot_dimension_numbers<[1], [0], [0], [1], [0, 0, 1, 1], [], []>} : vector<256x16xf32>, vector<16x256xf32>, vector<256x256xf32> -> vector<256x256xf32>
    %c32 = arith.constant 32 : index
    %195 = memref.load %arg1[%c32] : memref<33xf32, #tpu.memory_space<smem>>
    %196 = vector.broadcast %195 : f32 to vector<256x256xf32>
    %197 = arith.addf %194, %196 : vector<256x256xf32>
    %c0_133 = arith.constant 0 : index
    %c0_134 = arith.constant 0 : index
    %c0_135 = arith.constant 0 : index
    %c0_136 = arith.constant 0 : index
    %198 = vector.load %arg5[%c0_133, %c0_134, %c0_135, %c0_136] : memref<1x1x256x256xf32, #tpu.memory_space<vmem>>, vector<1x1x256x256xf32>
    %199 = vector.shape_cast %198 : vector<1x1x256x256xf32> to vector<256x256xf32>
    %200 = vector.shape_cast %197 : vector<256x256xf32> to vector<1x1x256x256xf32>
    tpu.vector_store %arg5[%c0_133, %c0_134, %c0_135, %c0_136], %200 {strides = array<i32>} : memref<1x1x256x256xf32, #tpu.memory_space<vmem>>, vector<1x1x256x256xf32>,
    return
  }
  func.func @transform_0(%arg0: i32) -> i32 {
    %c0_i32 = arith.constant 0 : i32
    %c0_i32_0 = arith.constant 0 : i32
    return %c0_i32 : i32
  }
  func.func @transform_1(%arg0: i32) -> (i32, i32, i32, i32) {
    %c0_i32 = arith.constant 0 : i32
    %c0_i32_0 = arith.constant 0 : i32
    %c0_i32_1 = arith.constant 0 : i32
    %c0_i32_2 = arith.constant 0 : i32
    return %arg0, %c0_i32, %c0_i32_0, %c0_i32_1 : i32, i32, i32, i32
  }
  func.func @transform_2(%arg0: i32) -> (i32, i32) {
    %c0_i32 = arith.constant 0 : i32
    %c0_i32_0 = arith.constant 0 : i32
    %c0_i32_1 = arith.constant 0 : i32
    return %c0_i32, %c0_i32_0 : i32, i32
  }
  func.func @transform_3(%arg0: i32) -> (i32, i32) {
    %c0_i32 = arith.constant 0 : i32
    %c0_i32_0 = arith.constant 0 : i32
    %c0_i32_1 = arith.constant 0 : i32
    return %c0_i32, %c0_i32_0 : i32, i32
  }
  func.func @transform_4(%arg0: i32) -> (i32, i32, i32, i32) {
    %c0_i32 = arith.constant 0 : i32
    %c0_i32_0 = arith.constant 0 : i32
    %c0_i32_1 = arith.constant 0 : i32
    %c0_i32_2 = arith.constant 0 : i32
    return %arg0, %c0_i32, %c0_i32_0, %c0_i32_1 : i32, i32, i32, i32
  }
}

</mosaic_0001>

<bundles_post_ra>
// kernel: tpu_custom_call.1
= control target key start
LH: loop header
LB: loop body
LE: loop exit
PB: predicated region body
PF: predicated region fallthrough
CT: control target
= control target key end

     0   :  { %9 = vsyncpa [#allocation4], 0  ;;  %s2186_s0 = inlined_call_operand.vmem [shape: f32[33], index: 0, kind: input, shape index: {}]   ;;  %s2187_s1 = inlined_call_operand.vmem [shape: f32[2,32,16,16], index: 1, kind: input, shape index: {}]   ;;  %s2188_s2 = inlined_call_operand.vmem [shape: f32[256,16], index: 2, kind: input, shape index: {}]   ;;  %s2189_s3 = inlined_call_operand.vmem [shape: f32[16,256], index: 3, kind: input, shape index: {}]   ;;  %s2190_s4 = inlined_call_operand.hbm [shape: f32[2,1,256,256], index: 4, kind: output, shape index: {}]  }
   0x1   :  { %10 = vsyncpa [#allocation3], 0 }
   0x2   :  { %12 = vsyncpa [#allocation3 + $0x1], 0  ;;  %s1594_s15 = smov 0   ;;  %s1596_s16 = smov 0  }
   0x3   :  { %s1598_s17 = smov 0   ;;  %s1600_s18 = smov 0  }
   0x4 LB: > { %s1615_s19 = sadd.s32 4294967295, %s1564_s18   ;;  %s1219_s20 = sadd.s32 4294967294, %s1564_s18   ;;  %s1564_s18 = sphi %s1600_s18, %s2196_s18   ;;  %s1560_s17 = sphi %s1598_s17, %s2195_s17   ;;  %s1556_s16 = sphi %s1596_s16, %s2194_s16   ;;  %s1552_s15 = sphi %s1594_s15, %s2193_s15  }
   0x5   : > { %s1619_s21 = sadd.s32 1, %s1564_s18   ;;  %s114_s22 = sadd.s32 1, %s1560_s17 }
   0x6   : > { %s111_s23 = ssub.s32 %s1564_s18, %s1619_s21  ;;  %p124_p0 = scmp.ne.s32.totalorder %s1560_s17, %s1556_s16 }
   0x7   : > { %p112_p1 = scmp.eq.s32.totalorder %s111_s23, 0  ;;  %p125_p2 = scmp.eq.s32.totalorder %s1615_s19, 1 }
   0x8   : > { %p130_p3 = scmp.ne.s32.totalorder %s1556_s16, %s1552_s15  ;;  %p131_p4 = scmp.eq.s32.totalorder %s1219_s20, 1 }
   0x9   : > { %s1630_s24 = scalar_select %p112_p1, %s1560_s17, %s114_s22  }
   0xa   : > { %p1632_p5 = por %p125_p2, %p124_p0  ;;  %p1636_p6 = por %p131_p4, %p130_p3 }
   0xb   : > { %p1220_p7 = scmp.ge.s32.totalorder %s1564_s18, 1  ;;  %p138_p8 = scmp.lt.s32.totalorder %s1564_s18, 3 }
   0xc   : > { %p1445_p9 = scmp.eq.s32.totalorder %s1615_s19, 0  ;;  %s150_s29 = sshll.u32 %s2186_s0, 4  ;;  %s151_s29 = int_to_ptr.vmem [resolvable:$true] %s150_s29 }
   0xd   : > { %p139_p10 = pnand %p1220_p7, %p138_p8  ;;  %s1566_s30 = smov [#allocation2]  }
   0xf   : > { %p1437_p11 = pneg %p139_p10  ;;  %177 = sbr.rel (%p139_p10) target bundleno = 546 (0x222), region = 36 }
  0x11   : > { %p1438_p12 = pnand %p1445_p9, %p1437_p11 }
  0x13   : > { %1440 = dma.vmem_to_smem (!%p1438_p12), %s151_s29, 16, %s1566_s30, [#allocation4]  }
  0x14   : > { %1543 = dma.done.wait (%p1445_p9), [#allocation4], 16  }
  0x15   : > { %1545 = vsyncadd (%p1445_p9), [#allocation4], 4294967280 }
  0x16   : > { %184 = sfence }
  0x17   : > { %p205_p13 = scmp.lt.s32.totalorder %s1615_s19, 1  ;;  %s1647_s5 = sld [smem:[#allocation2]]  ;;  %vm527_vm0 = vcmask 130048  }
  0x18   : > { %s1649_s6 = sld [smem:[#allocation2 + $0x1]] }
  0x19   : > { %s206_s7 = scalar_select %p205_p13, %s1615_s19, 1 }
  0x1a   : > { %s1652_s8 = sld [smem:[#allocation2 + $0x2]] }
  0x1b   : > { %s1423_s9 = sshll.u32 %s206_s7, 9  ;;  %s1654_s10 = sld [smem:[#allocation2 + $0x3]] }
  0x1c   : > { %s1659_s13 = scalar_lea.vmem %s2187_s1, %s1423_s9  ;;  %s1661_s14 = sld [smem:[#allocation2 + $0x4]] }
  0x1d   : > { %v211_v0 = vld [vmem:[%s1659_s13 + $0x8] sm:$0xff]  ;;  %v213_v1 = vstv %s1647_s5  ;;  %v1229_v2 = vld [vmem:[%s1659_s13 + $0x18] sm:$0xff]  ;;  %s1666_s20 = sld [smem:[#allocation2 + $0x5]]  ;;  %v210_v19 = vld [vmem:[%s1659_s13] sm:$0xff] }
  0x1e   : > { %v215_v3 = vmul.f32 %v213_v1, %v211_v0  ;;  %v220_v4 = vstv %s1649_s6  ;;  %v1232_v5 = vld [vmem:[%s1659_s13 + $0x28] sm:$0xff]  ;;  %s1670_s22 = sld [smem:[#allocation2 + $0x6]]  ;;  %v1235_v7 = vld [vmem:[%s1659_s13 + $0x38] sm:$0xff]  ;;  %v214_v22 = vmul.f32 %v213_v1, %v210_v19  ;;  %v1228_v23 = vld [vmem:[%s1659_s13 + $0x10] sm:$0xff] }
  0x1f   : > { %v222_v6 = vmul.f32 %v1229_v2, %v220_v4  ;;  %s1673_s23 = sld [smem:[#allocation2 + $0x7]]  ;;  %v1238_v9 = vld [vmem:[%s1659_s13 + $0x48] sm:$0xff]  ;;  %v1241_v15 = vld [vmem:[%s1659_s13 + $0x58] sm:$0xff]  ;;  %v1231_v24 = vld [vmem:[%s1659_s13 + $0x20] sm:$0xff]  ;;  %v221_v27 = vmul.f32 %v1228_v23, %v220_v4 }
  0x20   : > { %v229_v8 = vstv %s1652_s8  ;;  %s1677_s27 = sld [smem:[#allocation2 + $0x8]]  ;;  %v1244_v20 = vld [vmem:[%s1659_s13 + $0x68] sm:$0xff]  ;;  %v1234_v28 = vld [vmem:[%s1659_s13 + $0x30] sm:$0xff]  ;;  %v1247_v29 = vld [vmem:[%s1659_s13 + $0x78] sm:$0xff] }
  0x21   : > { %v224_v10 = vadd.f32 %v222_v6, %v215_v3  ;;  %v231_v11 = vmul.f32 %v1232_v5, %v229_v8  ;;  %v238_v12 = vstv %s1654_s10  ;;  %s1682_s28 = sld [smem:[#allocation2 + $0x9]]  ;;  %v230_v31 = vmul.f32 %v1231_v24, %v229_v8  ;;  %v1237_v32 = vld [vmem:[%s1659_s13 + $0x40] sm:$0xff]  ;;  %v1250_v37 = vld [vmem:[%s1659_s13 + $0x88] sm:$0xff]  ;;  %v1240_v39 = vld [vmem:[%s1659_s13 + $0x50] sm:$0xff] }
  0x22   : > { %v240_v13 = vmul.f32 %v1235_v7, %v238_v12  ;;  %v247_v14 = vstv %s1661_s14  ;;  %s1688_s29 = sld [smem:[#allocation2 + $0xa]]  ;;  %v223_v35 = vadd.f32 %v221_v27, %v214_v22  ;;  %v239_v36 = vmul.f32 %v1234_v28, %v238_v12  ;;  %v1253_v44 = vld [vmem:[%s1659_s13 + $0x98] sm:$0xff]  ;;  %v1243_v46 = vld [vmem:[%s1659_s13 + $0x60] sm:$0xff]  ;;  %v1256_v51 = vld [vmem:[%s1659_s13 + $0xa8] sm:$0xff] }
  0x23   : > { %v233_v16 = vadd.f32 %v231_v11, %v224_v10  ;;  %v249_v17 = vmul.f32 %v1238_v9, %v247_v14  ;;  %v256_v18 = vstv %s1666_s20  ;;  %s1695_s30 = sld [smem:[#allocation2 + $0xb]]  ;;  %v248_v43 = vmul.f32 %v1237_v32, %v247_v14  ;;  %v1246_v53 = vld [vmem:[%s1659_s13 + $0x70] sm:$0xff]  ;;  %v1259_v58 = vld [vmem:[%s1659_s13 + $0xb8] sm:$0xff]  ;;  %v1249_v60 = vld [vmem:[%s1659_s13 + $0x80] sm:$0xff] }
  0x24   : > { %v265_v21 = vstv %s1670_s22  ;;  %v258_v26 = vmul.f32 %v1241_v15, %v256_v18  ;;  %s1700_s5 = sld [smem:[#allocation2 + $0xc]]  ;;  %v232_v42 = vadd.f32 %v230_v31, %v223_v35  ;;  %v257_v50 = vmul.f32 %v1240_v39, %v256_v18  ;;  %v1262_v1 = vld [vmem:[%s1659_s13 + $0xc8] sm:$0xff]  ;;  %v1252_v3 = vld [vmem:[%s1659_s13 + $0x90] sm:$0xff]  ;;  %v1265_v8 = vld [vmem:[%s1659_s13 + $0xd8] sm:$0xff] }
  0x25   : > { %v242_v25 = vadd.f32 %v240_v13, %v233_v16  ;;  %v274_v30 = vstv %s1673_s23  ;;  %v267_v34 = vmul.f32 %v1244_v20, %v265_v21  ;;  %s1705_s6 = sld [smem:[#allocation2 + $0xd]]  ;;  %v266_v57 = vmul.f32 %v1243_v46, %v265_v21  ;;  %v1255_v10 = vld [vmem:[%s1659_s13 + $0xa0] sm:$0xff]  ;;  %v1268_v15 = vld [vmem:[%s1659_s13 + $0xe8] sm:$0xff]  ;;  %v1271_v22 = vld [vmem:[%s1659_s13 + $0xf8] sm:$0xff] }
  0x26   : > { %v283_v38 = vstv %s1677_s27  ;;  %v276_v41 = vmul.f32 %v1247_v29, %v274_v30  ;;  %v241_v49 = vadd.f32 %v239_v36, %v232_v42  ;;  %s1710_s7 = sld [smem:[#allocation2 + $0xe]]  ;;  %v275_v0 = vmul.f32 %v1246_v53, %v274_v30  ;;  %v1261_v24 = vld [vmem:[%s1659_s13 + $0xc0] sm:$0xff]  ;;  %v1274_v29 = vld [vmem:[%s1659_s13 + $0x108] sm:$0xff]  ;;  %v1264_v31 = vld [vmem:[%s1659_s13 + $0xd0] sm:$0xff] }
  0x27   : > { %v251_v33 = vadd.f32 %v249_v17, %v242_v25  ;;  %v292_v45 = vstv %s1682_s28  ;;  %v285_v48 = vmul.f32 %v1250_v37, %v283_v38  ;;  %s1715_s8 = sld [smem:[#allocation2 + $0xf]]  ;;  %v284_v7 = vmul.f32 %v1249_v60, %v283_v38  ;;  %v1258_v17 = vld [vmem:[%s1659_s13 + $0xb0] sm:$0xff]  ;;  %v1277_v36 = vld [vmem:[%s1659_s13 + $0x118] sm:$0xff]  ;;  %v1267_v38 = vld [vmem:[%s1659_s13 + $0xe0] sm:$0xff] }
  0x28   : > { %v301_v52 = vstv %s1688_s29  ;;  %v294_v55 = vmul.f32 %v1253_v44, %v292_v45  ;;  %v250_v56 = vadd.f32 %v248_v43, %v241_v49  ;;  %s1720_s9 = sld [smem:[#allocation2 + $0x10]]  ;;  %v293_v14 = vmul.f32 %v1252_v3, %v292_v45  ;;  %v1280_v43 = vld [vmem:[%s1659_s13 + $0x128] sm:$0xff]  ;;  %v1270_v45 = vld [vmem:[%s1659_s13 + $0xf0] sm:$0xff] }
  0x29   : > { %v260_v40 = vadd.f32 %v258_v26, %v251_v33  ;;  %v310_v59 = vstv %s1695_s30  ;;  %v303_v62 = vmul.f32 %v1256_v51, %v301_v52  ;;  %s1725_s10 = sld [smem:[#allocation2 + $0x11]]  ;;  %v302_v21 = vmul.f32 %v1255_v10, %v301_v52  ;;  %v1273_v52 = vld [vmem:[%s1659_s13 + $0x100] sm:$0xff] }
  0x2a   : > { %v259_v63 = vadd.f32 %v257_v50, %v250_v56  ;;  %v319_v2 = vstv %s1700_s5  ;;  %v312_v5 = vmul.f32 %v1259_v58, %v310_v59  ;;  %s1730_s11 = sld [smem:[#allocation2 + $0x12]]  ;;  %v311_v28 = vmul.f32 %v1258_v17, %v310_v59  ;;  %v1283_v50 = vld [vmem:[%s1659_s13 + $0x138] sm:$0xff]  ;;  %v1276_v59 = vld [vmem:[%s1659_s13 + $0x110] sm:$0xff] }
  0x2b   : > { %v269_v47 = vadd.f32 %v267_v34, %v260_v40  ;;  %v328_v9 = vstv %s1705_s6  ;;  %v321_v12 = vmul.f32 %v1262_v1, %v319_v2  ;;  %s1735_s12 = sld [smem:[#allocation2 + $0x13]]  ;;  %v320_v35 = vmul.f32 %v1261_v24, %v319_v2  ;;  %v1279_v2 = vld [vmem:[%s1659_s13 + $0x120] sm:$0xff] }
  0x2c   : > { %v268_v6 = vadd.f32 %v266_v57, %v259_v63  ;;  %v337_v16 = vstv %s1710_s7  ;;  %v330_v19 = vmul.f32 %v1265_v8, %v328_v9  ;;  %s1740_s14 = sld [smem:[#allocation2 + $0x14]]  ;;  %v329_v42 = vmul.f32 %v1264_v31, %v328_v9  ;;  %v1286_v57 = vld [vmem:[%s1659_s13 + $0x148] sm:$0xff]  ;;  %v1282_v9 = vld [vmem:[%s1659_s13 + $0x130] sm:$0xff] }
  0x2d   : > { %v278_v54 = vadd.f32 %v276_v41, %v269_v47  ;;  %v346_v23 = vstv %s1715_s8  ;;  %v339_v26 = vmul.f32 %v1268_v15, %v337_v16  ;;  %s1745_s20 = sld [smem:[#allocation2 + $0x15]]  ;;  %v338_v49 = vmul.f32 %v1267_v38, %v337_v16  ;;  %v1285_v16 = vld [vmem:[%s1659_s13 + $0x140] sm:$0xff] }
  0x2e   : > { %v277_v13 = vadd.f32 %v275_v0, %v268_v6  ;;  %v355_v30 = vstv %s1720_s9  ;;  %v348_v33 = vmul.f32 %v1271_v22, %v346_v23  ;;  %s1750_s22 = sld [smem:[#allocation2 + $0x16]]  ;;  %v347_v56 = vmul.f32 %v1270_v45, %v346_v23  ;;  %v1289_v0 = vld [vmem:[%s1659_s13 + $0x158] sm:$0xff]  ;;  %v1288_v23 = vld [vmem:[%s1659_s13 + $0x150] sm:$0xff] }
  0x2f   : > { %v287_v61 = vadd.f32 %v285_v48, %v278_v54  ;;  %v364_v37 = vstv %s1725_s10  ;;  %v357_v40 = vmul.f32 %v1274_v29, %v355_v30  ;;  %s1755_s23 = sld [smem:[#allocation2 + $0x17]]  ;;  %v356_v63 = vmul.f32 %v1273_v52, %v355_v30  ;;  %v1291_v30 = vld [vmem:[%s1659_s13 + $0x160] sm:$0xff]  ;;  %s1518_s10 = scalar_lea.hbm %s2190_s4, 1024 }
  0x30   : > { %v286_v20 = vadd.f32 %v284_v7, %v277_v13  ;;  %v373_v44 = vstv %s1730_s11  ;;  %v366_v47 = vmul.f32 %v1277_v36, %v364_v37  ;;  %s1760_s27 = sld [smem:[#allocation2 + $0x18]]  ;;  %v365_v6 = vmul.f32 %v1276_v59, %v364_v37  ;;  %v1292_v7 = vld [vmem:[%s1659_s13 + $0x168] sm:$0xff]  ;;  %v1294_v37 = vld [vmem:[%s1659_s13 + $0x170] sm:$0xff] }
  0x31   : > { %v296_v4 = vadd.f32 %v294_v55, %v287_v61  ;;  %v382_v51 = vstv %s1735_s12  ;;  %v375_v54 = vmul.f32 %v1280_v43, %v373_v44  ;;  %s1765_s28 = sld [smem:[#allocation2 + $0x19]]  ;;  %v374_v13 = vmul.f32 %v1279_v2, %v373_v44  ;;  %v1297_v44 = vld [vmem:[%s1659_s13 + $0x180] sm:$0xff] }
  0x32   : > { %v295_v27 = vadd.f32 %v293_v14, %v286_v20  ;;  %v391_v58 = vstv %s1740_s14  ;;  %v384_v61 = vmul.f32 %v1283_v50, %v382_v51  ;;  %s1770_s29 = sld [smem:[#allocation2 + $0x1a]]  ;;  %v1295_v14 = vld [vmem:[%s1659_s13 + $0x178] sm:$0xff]  ;;  %v383_v20 = vmul.f32 %v1282_v9, %v382_v51  ;;  %v1300_v51 = vld [vmem:[%s1659_s13 + $0x190] sm:$0xff]  ;;  %s202_s14 = sand.u32 1, %s1556_s16  }
  0x33   : > { %v305_v11 = vadd.f32 %v303_v62, %v296_v4  ;;  %v400_v1 = vstv %s1745_s20  ;;  %v393_v4 = vmul.f32 %v1286_v57, %v391_v58  ;;  %s1775_s30 = sld [smem:[#allocation2 + $0x1b]]  ;;  %s1225_s20 = sshll.u32 %s202_s14, 9 }
  0x34   : > { %v304_v34 = vadd.f32 %v302_v21, %v295_v27  ;;  %v409_v8 = vstv %s1750_s22  ;;  %v1298_v21 = vld [vmem:[%s1659_s13 + $0x188] sm:$0xff]  ;;  %s1780_s5 = sld [smem:[#allocation2 + $0x1c]]  ;;  %v392_v27 = vmul.f32 %v1285_v16, %v391_v58  ;;  %v1303_v58 = vld [vmem:[%s1659_s13 + $0x1a0] sm:$0xff]  ;;  %s2007_s22 = scalar_lea.vmem [#allocation5], %s1225_s20 }
  0x35   : > { %v314_v18 = vadd.f32 %v312_v5, %v305_v11  ;;  %v402_v11 = vmul.f32 %v1289_v0, %v400_v1  ;;  %v418_v15 = vstv %s1755_s23  ;;  %s1785_s6 = sld [smem:[#allocation2 + $0x1d]]  ;;  %s1424_s23 = sshll.u32 %s1615_s19, 9 }
  0x36   : > { %v313_v41 = vadd.f32 %v311_v28, %v304_v34  ;;  %v427_v22 = vstv %s1760_s27  ;;  %v1301_v28 = vld [vmem:[%s1659_s13 + $0x198] sm:$0xff]  ;;  %v401_v34 = vmul.f32 %v1288_v23, %v400_v1  ;;  %s1790_s7 = sld [smem:[#allocation2 + $0x1e]]  ;;  %v1306_v1 = vld [vmem:[%s1659_s13 + $0x1b0] sm:$0xff]  ;;  %s1130_s19 = scalar_lea.sflag [#allocation3], %s202_s14 }
  0x37   : > { %v323_v25 = vadd.f32 %v321_v12, %v314_v18  ;;  %v411_v18 = vmul.f32 %v1292_v7, %v409_v8  ;;  %v436_v29 = vstv %s1765_s28  ;;  %s1795_s8 = sld [smem:[#allocation2 + $0x1f]] }
  0x38   : > { %v322_v48 = vadd.f32 %v320_v35, %v313_v41  ;;  %v1304_v35 = vld [vmem:[%s1659_s13 + $0x1a8] sm:$0xff]  ;;  %v445_v36 = vstv %s1770_s29  ;;  %v410_v41 = vmul.f32 %v1291_v30, %v409_v8  ;;  %v1309_v8 = vld [vmem:[%s1659_s13 + $0x1c0] sm:$0xff]  ;;  %s1141_s29 = scalar_lea.hbm %s2190_s4, %s1424_s23 }
  0x39   : > { %v332_v32 = vadd.f32 %v330_v19, %v323_v25  ;;  %v420_v25 = vmul.f32 %v1295_v14, %v418_v15  ;;  %v454_v43 = vstv %s1775_s30  ;;  %v495_v30 = vld [vmem:[%s2188_s2] sm:$0xff]  ;;  %s1142_s30 = sshll.u32 %s2007_s22, 4  ;;  %s1143_s30 = int_to_ptr.vmem [resolvable:$true] %s1142_s30 }
  0x3a   : > { %v331_v55 = vadd.f32 %v329_v42, %v322_v48  ;;  %v1307_v42 = vld [vmem:[%s1659_s13 + $0x1b8] sm:$0xff]  ;;  %v419_v48 = vmul.f32 %v1294_v37, %v418_v15  ;;  %v463_v50 = vstv %s1780_s5  ;;  %s1144_s5 = sshll.u32 %s1141_s29, 4  ;;  %s1145_s5 = int_to_ptr.hbm [resolvable:$true] %s1144_s5 }
  0x3b   : > { %v341_v39 = vadd.f32 %v339_v26, %v332_v32  ;;  %v429_v32 = vmul.f32 %v1298_v21, %v427_v22  ;;  %v472_v57 = vstv %s1785_s6  ;;  %v522_v37 = vld [vmem:[%s2188_s2 + $0xd8] sm:$0xff]  ;;  %s1512_s6 = sshra.s32 %s1145_s5, 4  ;;  %s1513_s6 = int_to_ptr.hbm [resolvable:$true] %s1512_s6 }
  0x3c   : > { %v340_v62 = vadd.f32 %v338_v49, %v331_v55  ;;  %v1310_v49 = vld [vmem:[%s1659_s13 + $0x1c8] sm:$0xff]  ;;  %v428_v55 = vmul.f32 %v1297_v44, %v427_v22  ;;  %v481_v0 = vstv %s1790_s7  ;;  %v1318_v22 = vld [vmem:[%s1659_s13 + $0x1f0] sm:$0xff]  ;;  %v502_v44 = vld [vmem:[%s2188_s2 + $0x38] sm:$0xff]  ;;  %s1514_s7 = scalar_lea.hbm %s1513_s6, 512  ;;  %p1519_p3 = scmp.lt.s32.totalorder %s1513_s6, %s2190_s4 }
  0x3d   : > { %v350_v46 = vadd.f32 %v348_v33, %v341_v39  ;;  %v438_v39 = vmul.f32 %v1301_v28, %v436_v29  ;;  %v490_v7 = vstv %s1795_s8  ;;  %p1515_p0 = scmp.ne.s32.totalorder %s1513_s6, %s1514_s7  ;;  %p1520_p4 = scmp.lt.s32.totalorder %s1518_s10, %s1514_s7 }
  0x3e   : > { %v349_v5 = vadd.f32 %v347_v56, %v340_v62  ;;  %v1313_v56 = vld [vmem:[%s1659_s13 + $0x1d8] sm:$0xff]  ;;  %v437_v62 = vmul.f32 %v1300_v51, %v436_v29 }
  0x3f   : > { %v359_v53 = vadd.f32 %v357_v40, %v350_v46  ;;  %v447_v46 = vmul.f32 %v1304_v35, %v445_v36  ;;  %v521_v35 = vld [vmem:[%s2188_s2 + $0xd0] sm:$0xff]  ;;  %v740_v51 = vld [vmem:[%s2189_s3 + $0x18] sm:$0xff]  ;;  %p1516_p1 = pnand %p1515_p0, %p1632_p5  ;;  %p1521_p7 = por %p1520_p4, %p1519_p3 }
  0x40   : > { %v358_v12 = vadd.f32 %v356_v63, %v349_v5  ;;  %v1316_v63 = vld [vmem:[%s1659_s13 + $0x1e8] sm:$0xff]  ;;  %v446_v5 = vmul.f32 %v1303_v58, %v445_v36  ;;  %v498_v36 = vld [vmem:[%s2188_s2 + $0x18] sm:$0xff]  ;;  %966 = vmatpush.msra.mxu2 %v740_v51 }
  0x41   : > { %v368_v60 = vadd.f32 %v366_v47, %v359_v53  ;;  %v456_v53 = vmul.f32 %v1307_v42, %v454_v43  ;;  %v501_v42 = vld [vmem:[%s2188_s2 + $0x30] sm:$0xff]  ;;  %p1517_p2 = pneg %p1516_p1 }
  0x42   : > { %v367_v19 = vadd.f32 %v365_v6, %v358_v12  ;;  %v1319_v6 = vld [vmem:[%s1659_s13 + $0x1f8] sm:$0xff]  ;;  %v455_v12 = vmul.f32 %v1306_v1, %v454_v43  ;;  %v525_v43 = vld [vmem:[%s2188_s2 + $0xf0] sm:$0xff] }
  0x43   : > { %v377_v3 = vadd.f32 %v375_v54, %v368_v60  ;;  %v465_v60 = vmul.f32 %v1310_v49, %v463_v50  ;;  %v492_v15 = vmul.f32 %v1319_v6, %v490_v7  ;;  %v506_v49 = vld [vmem:[%s2188_s2 + $0x58] sm:$0xff]  ;;  %v513_v1 = vld [vmem:[%s2188_s2 + $0x90] sm:$0xff]  ;;  %p1522_p8 = pnand %p1521_p7, %p1517_p2 }
  0x44   : > { %v376_v26 = vadd.f32 %v374_v13, %v367_v19  ;;  %v1312_v13 = vld [vmem:[%s1659_s13 + $0x1d0] sm:$0xff] }
  0x45   : > { %v386_v10 = vadd.f32 %v384_v61, %v377_v3  ;;  %v474_v3 = vmul.f32 %v1313_v56, %v472_v57  ;;  %v473_v21 = vmul.f32 %v1312_v13, %v472_v57  ;;  %v509_v56 = vld [vmem:[%s2188_s2 + $0x70] sm:$0xff]  ;;  %v510_v57 = vld [vmem:[%s2188_s2 + $0x78] sm:$0xff] }
  0x46   : > { %v385_v33 = vadd.f32 %v383_v20, %v376_v26  ;;  %v517_v13 = vld [vmem:[%s2188_s2 + $0xb0] sm:$0xff] }
  0x47   : > { %v395_v17 = vadd.f32 %v393_v4, %v386_v10  ;;  %v483_v10 = vmul.f32 %v1316_v63, %v481_v0 }
  0x48   : > { %v394_v40 = vadd.f32 %v392_v27, %v385_v33  ;;  %v491_v27 = vmul.f32 %v1318_v22, %v490_v7  ;;  %v520_v33 = vld [vmem:[%s2188_s2 + $0xc8] sm:$0xff]  ;;  %v515_v7 = vld [vmem:[%s2188_s2 + $0xa0] sm:$0xff] }
  0x49   : > { %v404_v24 = vadd.f32 %v402_v11, %v395_v17  ;;  %v464_v17 = vmul.f32 %v1309_v8, %v463_v50  ;;  %v739_v50 = vld [vmem:[%s2189_s3 + $0x10] sm:$0xff] }
  0x4a   : > { %v403_v47 = vadd.f32 %v401_v34, %v394_v40  ;;  %v497_v34 = vld [vmem:[%s2188_s2 + $0x10] sm:$0xff]  ;;  %v500_v40 = vld [vmem:[%s2188_s2 + $0x28] sm:$0xff]  ;;  %853 = vmatpush.msra.mxu1 %v739_v50 }
  0x4b   : > { %v413_v31 = vadd.f32 %v411_v18, %v404_v24  ;;  %v1315_v18 = vld [vmem:[%s1659_s13 + $0x1e0] sm:$0xff]  ;;  %s1353_s13 = sld [smem:[#allocation2 + $0x20]] }
  0x4c   : > { %v412_v54 = vadd.f32 %v410_v41, %v403_v47  ;;  %v524_v41 = vld [vmem:[%s2188_s2 + $0xe8] sm:$0xff] }
  0x4d   : > { %v422_v38 = vadd.f32 %v420_v25, %v413_v31  ;;  %v482_v25 = vmul.f32 %v1315_v18, %v481_v0  ;;  %v519_v31 = vld [vmem:[%s2188_s2 + $0xc0] sm:$0xff]  ;;  %v504_v47 = vld [vmem:[%s2188_s2 + $0x48] sm:$0xff] }
  0x4e   : > { %v421_v61 = vadd.f32 %v419_v48, %v412_v54  ;;  %v505_v48 = vld [vmem:[%s2188_s2 + $0x50] sm:$0xff]  ;;  %v507_v54 = vld [vmem:[%s2188_s2 + $0x60] sm:$0xff] }
  0x4f   : > { %v431_v45 = vadd.f32 %v429_v32, %v422_v38  ;;  %v496_v32 = vld [vmem:[%s2188_s2 + $0x8] sm:$0xff]  ;;  %v499_v38 = vld [vmem:[%s2188_s2 + $0x20] sm:$0xff] }
  0x50   : > { %v430_v4 = vadd.f32 %v428_v55, %v421_v61  ;;  %v508_v55 = vld [vmem:[%s2188_s2 + $0x68] sm:$0xff] }
  0x51   : > { %v440_v52 = vadd.f32 %v438_v39, %v431_v45  ;;  %v523_v39 = vld [vmem:[%s2188_s2 + $0xe0] sm:$0xff]  ;;  %v526_v45 = vld [vmem:[%s2188_s2 + $0xf8] sm:$0xff] }
  0x52   : > { %v439_v11 = vadd.f32 %v437_v62, %v430_v4  ;;  %v512_v62 = vld [vmem:[%s2188_s2 + $0x88] sm:$0xff]  ;;  %v514_v4 = vld [vmem:[%s2188_s2 + $0x98] sm:$0xff] }
  0x53   : > { %v449_v59 = vadd.f32 %v447_v46, %v440_v52  ;;  %v503_v46 = vld [vmem:[%s2188_s2 + $0x40] sm:$0xff] }
  0x54   : > { %v448_v16 = vadd.f32 %v446_v5, %v439_v11  ;;  %v737_v52 = vld [vmem:[%s2189_s3] sm:$0xff] }
  0x55   : > { %v458_v2 = vadd.f32 %v456_v53, %v449_v59  ;;  %v738_v53 = vld [vmem:[%s2189_s3 + $0x8] sm:$0xff]  ;;  %854 = vmatpush.msra.mxu1 %v737_v52  ;;  %v511_v59 = vld [vmem:[%s2188_s2 + $0x80] sm:$0xff] }
  0x56   : > { %v457_v20 = vadd.f32 %v455_v12, %v448_v16  ;;  %967 = vmatpush.msra.mxu2 %v738_v53  ;;  %v518_v16 = vld [vmem:[%s2188_s2 + $0xb8] sm:$0xff] }
  0x57   : > { %v467_v9 = vadd.f32 %v465_v60, %v458_v2 }
  0x58   : > { %v466_v24 = vadd.f32 %v464_v17, %v457_v20 }
  0x59   : > { %v476_v14 = vadd.f32 %v474_v3, %v467_v9 }
  0x5a   : > { %v475_v26 = vadd.f32 %v473_v21, %v466_v24 }
  0x5b   : > { %v485_v19 = vadd.f32 %v483_v10, %v476_v14  ;;  %v516_v10 = vld [vmem:[%s2188_s2 + $0xa8] sm:$0xff] }
  0x5c   : > { %v484_v28 = vadd.f32 %v482_v25, %v475_v26  ;;  %v2003_v26 = vstv %s1353_s13 }
  0x5d   : > { %v494_v23 = vadd.f32 %v492_v15, %v485_v19 }
  0x5e   : > { %v493_v29 = vadd.f32 %v491_v27, %v484_v28 }
  0x5f   : > { %638 = vmatpush.msra.mxu0 %v494_v23  ;;  %1425 = vmatpush.msra.mxu3 %v494_v23 }
  0x61   : > { %639 = vmatpush.msra.mxu0 %v493_v29  ;;  %1426 = vmatpush.msra.mxu3 %v493_v29 }
  0x62   : > { %1321 = vmatmul.msk.f32.vlgmr.msra.gmra.mxu0 %vm527_vm0, %v495_v30  ;;  %1345 = vmatmul.msk.f32.vlgmr.msra.gmra.mxu3 %vm527_vm0, %v519_v31 }
  0x63   : > { %1427 = vmatpush.msrb.mxu3 %v739_v50 }
  0x65   : > { %1428 = vmatpush.msrb.mxu3 %v737_v52 }
  0x67   : > { %1429 = vmatpush.msra.mxu3 %v740_v51 }
  0x69   : > { %1430 = vmatpush.msra.mxu3 %v738_v53 }
  0x6a   : > { %1322 = vmatmul.msk.f32.gmra.mxu0 %vm527_vm0, %v496_v32  ;;  %1346 = vmatmul.msk.f32.gmra.mxu3 %vm527_vm0, %v520_v33 }
  0x72   : > { %1323 = vmatmul.msk.f32.gmra.mxu0 %vm527_vm0, %v497_v34  ;;  %1347 = vmatmul.msk.f32.gmra.mxu3 %vm527_vm0, %v521_v35 }
  0x7a   : > { %1324 = vmatmul.msk.f32.gmra.mxu0 %vm527_vm0, %v498_v36  ;;  %1348 = vmatmul.msk.f32.gmra.mxu3 %vm527_vm0, %v522_v37 }
  0x82   : > { %1325 = vmatmul.msk.f32.gmra.mxu0 %vm527_vm0, %v499_v38  ;;  %1349 = vmatmul.msk.f32.gmra.mxu3 %vm527_vm0, %v523_v39 }
  0x8a   : > { %1326 = vmatmul.msk.f32.gmra.mxu0 %vm527_vm0, %v500_v40  ;;  %1350 = vmatmul.msk.f32.gmra.mxu3 %vm527_vm0, %v524_v41 }
  0x92   : > { %1327 = vmatmul.msk.f32.gmra.mxu0 %vm527_vm0, %v501_v42  ;;  %1351 = vmatmul.msk.f32.gmra.mxu3 %vm527_vm0, %v525_v43 }
  0x9a   : > { %1328 = vmatmul.msk.f32.gmra.mxu0 %vm527_vm0, %v502_v44  ;;  %1352 = vmatmul.msk.f32.gmra.mxu3 %vm527_vm0, %v526_v45 }
  0xa2   : > { %1329 = vmatmul.msk.f32.gmra.mxu0 %vm527_vm0, %v503_v46 }
  0xaa   : > { %1330 = vmatmul.msk.f32.gmra.mxu0 %vm527_vm0, %v504_v47 }
  0xb2   : > { %1331 = vmatmul.msk.f32.gmra.mxu0 %vm527_vm0, %v505_v48 }
  0xba   : > { %1332 = vmatmul.msk.f32.gmra.mxu0 %vm527_vm0, %v506_v49 }
  0xc2   : > { %1333 = vmatmul.msk.f32.gmra.mxu0 %vm527_vm0, %v507_v54 }
  0xca   : > { %1334 = vmatmul.msk.f32.gmra.mxu0 %vm527_vm0, %v508_v55 }
  0xd2   : > { %1335 = vmatmul.msk.f32.gmra.mxu0 %vm527_vm0, %v509_v56 }
  0xda   : > { %1336 = vmatmul.msk.f32.gmra.mxu0 %vm527_vm0, %v510_v57 }
  0xdf   : > { %v641_v58 = vpop.f32.mrf.mxu0 }
  0xe0   : > { %1354 = vmatmul.msk.f32.vlgmr.msra.gmra.mxu1 %vm527_vm0, %v641_v58  ;;  %1386 = vmatmul.msk.f32.vlgmr.msra.gmra.mxu2 %vm527_vm0, %v641_v58 }
  0xe2   : > { %1337 = vmatmul.msk.f32.gmra.mxu0 %vm527_vm0, %v511_v59 }
  0xe5   : > { %v713_v60 = vpop.f32.mrf.mxu3 }
  0xe6   : > { %1378 = vmatmul.msk.f32.vlgmr.msrb.gmra.mxu3 %vm527_vm0, %v713_v60 }
  0xe7   : > { %v644_v61 = vpop.f32.mrf.mxu0 }
  0xe8   : > { %1355 = vmatmul.msk.f32.gmra.mxu1 %vm527_vm0, %v644_v61  ;;  %1387 = vmatmul.msk.f32.gmra.mxu2 %vm527_vm0, %v644_v61 }
  0xea   : > { %1338 = vmatmul.msk.f32.gmra.mxu0 %vm527_vm0, %v512_v62 }
  0xed   : > { %v716_v63 = vpop.f32.mrf.mxu3 }
  0xee   : > { %1379 = vmatmul.msk.f32.gmra.mxu3 %vm527_vm0, %v716_v63 }
  0xef   : > { %v647_v0 = vpop.f32.mrf.mxu0 }
  0xf0   : > { %1356 = vmatmul.msk.f32.gmra.mxu1 %vm527_vm0, %v647_v0  ;;  %1388 = vmatmul.msk.f32.gmra.mxu2 %vm527_vm0, %v647_v0 }
  0xf2   : > { %1339 = vmatmul.msk.f32.gmra.mxu0 %vm527_vm0, %v513_v1 }
  0xf5   : > { %v719_v2 = vpop.f32.mrf.mxu3 }
  0xf6   : > { %1380 = vmatmul.msk.f32.gmra.mxu3 %vm527_vm0, %v719_v2 }
  0xf7   : > { %v650_v3 = vpop.f32.mrf.mxu0 }
  0xf8   : > { %1357 = vmatmul.msk.f32.gmra.mxu1 %vm527_vm0, %v650_v3  ;;  %1389 = vmatmul.msk.f32.gmra.mxu2 %vm527_vm0, %v650_v3 }
  0xfa   : > { %1340 = vmatmul.msk.f32.gmra.mxu0 %vm527_vm0, %v514_v4 }
  0xfd   : > { %v722_v5 = vpop.f32.mrf.mxu3 }
  0xfe   : > { %1381 = vmatmul.msk.f32.gmra.mxu3 %vm527_vm0, %v722_v5 }
  0xff   : > { %v653_v6 = vpop.f32.mrf.mxu0 }
 0x100   : > { %1358 = vmatmul.msk.f32.gmra.mxu1 %vm527_vm0, %v653_v6  ;;  %1390 = vmatmul.msk.f32.gmra.mxu2 %vm527_vm0, %v653_v6 }
 0x102   : > { %1341 = vmatmul.msk.f32.gmra.mxu0 %vm527_vm0, %v515_v7 }
 0x105   : > { %v725_v8 = vpop.f32.mrf.mxu3 }
 0x106   : > { %1382 = vmatmul.msk.f32.gmra.mxu3 %vm527_vm0, %v725_v8 }
 0x107   : > { %v656_v9 = vpop.f32.mrf.mxu0 }
 0x108   : > { %1359 = vmatmul.msk.f32.gmra.mxu1 %vm527_vm0, %v656_v9  ;;  %1391 = vmatmul.msk.f32.gmra.mxu2 %vm527_vm0, %v656_v9 }
 0x10a   : > { %1342 = vmatmul.msk.f32.gmra.mxu0 %vm527_vm0, %v516_v10 }
 0x10d   : > { %v728_v11 = vpop.f32.mrf.mxu3 }
 0x10e   : > { %1383 = vmatmul.msk.f32.gmra.mxu3 %vm527_vm0, %v728_v11 }
 0x10f   : > { %v659_v12 = vpop.f32.mrf.mxu0 }
 0x110   : > { %1360 = vmatmul.msk.f32.gmra.mxu1 %vm527_vm0, %v659_v12  ;;  %1392 = vmatmul.msk.f32.gmra.mxu2 %vm527_vm0, %v659_v12 }
 0x112   : > { %1343 = vmatmul.msk.f32.gmra.mxu0 %vm527_vm0, %v517_v13 }
 0x115   : > { %v731_v14 = vpop.f32.mrf.mxu3 }
 0x116   : > { %1384 = vmatmul.msk.f32.gmra.mxu3 %vm527_vm0, %v731_v14 }
 0x117   : > { %v662_v15 = vpop.f32.mrf.mxu0 }
 0x118   : > { %1361 = vmatmul.msk.f32.gmra.mxu1 %vm527_vm0, %v662_v15  ;;  %1393 = vmatmul.msk.f32.gmra.mxu2 %vm527_vm0, %v662_v15 }
 0x11a   : > { %1344 = vmatmul.msk.f32.gmra.mxu0 %vm527_vm0, %v518_v16 }
 0x11d   : > { %v734_v17 = vpop.f32.mrf.mxu3 }
 0x11e   : > { %1385 = vmatmul.msk.f32.gmra.mxu3 %vm527_vm0, %v734_v17 }
 0x11f   : > { %v665_v18 = vpop.f32.mrf.mxu0 }
 0x120   : > { %1362 = vmatmul.msk.f32.gmra.mxu1 %vm527_vm0, %v665_v18  ;;  %1394 = vmatmul.msk.f32.gmra.mxu2 %vm527_vm0, %v665_v18 }
 0x126   : > { %1410 = vmatmul.msk.f32.vlgmr.msra.gmra.mxu3 %vm527_vm0, %v713_v60 }
 0x127   : > { %v668_v19 = vpop.f32.mrf.mxu0 }
 0x128   : > { %1363 = vmatmul.msk.f32.gmra.mxu1 %vm527_vm0, %v668_v19  ;;  %1395 = vmatmul.msk.f32.gmra.mxu2 %vm527_vm0, %v668_v19 }
 0x12e   : > { %1411 = vmatmul.msk.f32.gmra.mxu3 %vm527_vm0, %v716_v63 }
 0x12f   : > { %v671_v20 = vpop.f32.mrf.mxu0 }
 0x130   : > { %1364 = vmatmul.msk.f32.gmra.mxu1 %vm527_vm0, %v671_v20  ;;  %1396 = vmatmul.msk.f32.gmra.mxu2 %vm527_vm0, %v671_v20 }
 0x136   : > { %1412 = vmatmul.msk.f32.gmra.mxu3 %vm527_vm0, %v719_v2 }
 0x137   : > { %v674_v21 = vpop.f32.mrf.mxu0 }
 0x138   : > { %1365 = vmatmul.msk.f32.gmra.mxu1 %vm527_vm0, %v674_v21  ;;  %1397 = vmatmul.msk.f32.gmra.mxu2 %vm527_vm0, %v674_v21 }
 0x13e   : > { %1413 = vmatmul.msk.f32.gmra.mxu3 %vm527_vm0, %v722_v5 }
 0x13f   : > { %v677_v22 = vpop.f32.mrf.mxu0 }
 0x140   : > { %1366 = vmatmul.msk.f32.gmra.mxu1 %vm527_vm0, %v677_v22  ;;  %1398 = vmatmul.msk.f32.gmra.mxu2 %vm527_vm0, %v677_v22 }
 0x146   : > { %1414 = vmatmul.msk.f32.gmra.mxu3 %vm527_vm0, %v725_v8 }
 0x147   : > { %v680_v23 = vpop.f32.mrf.mxu0 }
 0x148   : > { %1367 = vmatmul.msk.f32.gmra.mxu1 %vm527_vm0, %v680_v23  ;;  %1399 = vmatmul.msk.f32.gmra.mxu2 %vm527_vm0, %v680_v23 }
 0x14e   : > { %1415 = vmatmul.msk.f32.gmra.mxu3 %vm527_vm0, %v728_v11 }
 0x14f   : > { %v683_v24 = vpop.f32.mrf.mxu0 }
 0x150   : > { %1368 = vmatmul.msk.f32.gmra.mxu1 %vm527_vm0, %v683_v24  ;;  %1400 = vmatmul.msk.f32.gmra.mxu2 %vm527_vm0, %v683_v24 }
 0x156   : > { %1416 = vmatmul.msk.f32.gmra.mxu3 %vm527_vm0, %v731_v14 }
 0x157   : > { %v686_v25 = vpop.f32.mrf.mxu0 }
 0x158   : > { %1369 = vmatmul.msk.f32.gmra.mxu1 %vm527_vm0, %v686_v25  ;;  %1401 = vmatmul.msk.f32.gmra.mxu2 %vm527_vm0, %v686_v25 }
 0x15d   : > { %v856_v27 = vpop.f32.mrf.mxu1 }
 0x15e   : > { %v857_v28 = vadd.f32 %v856_v27, %v2003_v26  ;;  %1417 = vmatmul.msk.f32.gmra.mxu3 %vm527_vm0, %v734_v17 }
 0x15f   : > { %v689_v29 = vpop.f32.mrf.mxu0 }
 0x160   : > { %1065 = vst [vmem:[%s2007_s22] sm:$0xff] %v857_v28  ;;  %1370 = vmatmul.msk.f32.gmra.mxu1 %vm527_vm0, %v689_v29  ;;  %1402 = vmatmul.msk.f32.gmra.mxu2 %vm527_vm0, %v689_v29 }
 0x163   : > { %v969_v30 = vpop.f32.mrf.mxu2 }
 0x164   : > { %v970_v31 = vadd.f32 %v969_v30, %v2003_v26 }
 0x165   : > { %v859_v32 = vpop.f32.mrf.mxu1 }
 0x166   : > { %1066 = vst [vmem:[%s2007_s22 + $0x8] sm:$0xff] %v970_v31  ;;  %v860_v33 = vadd.f32 %v859_v32, %v2003_v26 }
 0x167   : > { %v692_v34 = vpop.f32.mrf.mxu0 }
 0x168   : > { %1067 = vst [vmem:[%s2007_s22 + $0x10] sm:$0xff] %v860_v33  ;;  %1371 = vmatmul.msk.f32.gmra.mxu1 %vm527_vm0, %v692_v34  ;;  %1403 = vmatmul.msk.f32.gmra.mxu2 %vm527_vm0, %v692_v34 }
 0x169   : > { %v928_v35 = vpop.f32.mrf.mxu3 }
 0x16a   : > { %v929_v36 = vadd.f32 %v928_v35, %v2003_v26 }
 0x16b   : > { %v972_v37 = vpop.f32.mrf.mxu2 }
 0x16c   : > { %1113 = vst [vmem:[%s2007_s22 + $0x180] sm:$0xff] %v929_v36  ;;  %v973_v38 = vadd.f32 %v972_v37, %v2003_v26 }
 0x16d   : > { %v862_v39 = vpop.f32.mrf.mxu1 }
 0x16e   : > { %1068 = vst [vmem:[%s2007_s22 + $0x18] sm:$0xff] %v973_v38  ;;  %v863_v40 = vadd.f32 %v862_v39, %v2003_v26 }
 0x16f   : > { %v695_v41 = vpop.f32.mrf.mxu0 }
 0x170   : > { %1069 = vst [vmem:[%s2007_s22 + $0x20] sm:$0xff] %v863_v40  ;;  %1372 = vmatmul.msk.f32.gmra.mxu1 %vm527_vm0, %v695_v41  ;;  %1404 = vmatmul.msk.f32.gmra.mxu2 %vm527_vm0, %v695_v41 }
 0x171   : > { %v931_v42 = vpop.f32.mrf.mxu3 }
 0x172   : > { %v932_v43 = vadd.f32 %v931_v42, %v2003_v26 }
 0x173   : > { %v975_v44 = vpop.f32.mrf.mxu2 }
 0x174   : > { %1115 = vst [vmem:[%s2007_s22 + $0x190] sm:$0xff] %v932_v43  ;;  %v976_v45 = vadd.f32 %v975_v44, %v2003_v26 }
 0x175   : > { %v865_v46 = vpop.f32.mrf.mxu1 }
 0x176   : > { %1070 = vst [vmem:[%s2007_s22 + $0x28] sm:$0xff] %v976_v45  ;;  %v866_v47 = vadd.f32 %v865_v46, %v2003_v26 }
 0x177   : > { %v698_v48 = vpop.f32.mrf.mxu0 }
 0x178   : > { %1071 = vst [vmem:[%s2007_s22 + $0x30] sm:$0xff] %v866_v47  ;;  %1373 = vmatmul.msk.f32.gmra.mxu1 %vm527_vm0, %v698_v48  ;;  %1405 = vmatmul.msk.f32.gmra.mxu2 %vm527_vm0, %v698_v48 }
 0x179   : > { %v934_v49 = vpop.f32.mrf.mxu3 }
 0x17a   : > { %v935_v50 = vadd.f32 %v934_v49, %v2003_v26 }
 0x17b   : > { %v978_v51 = vpop.f32.mrf.mxu2 }
 0x17c   : > { %1117 = vst [vmem:[%s2007_s22 + $0x1a0] sm:$0xff] %v935_v50  ;;  %v979_v52 = vadd.f32 %v978_v51, %v2003_v26 }
 0x17d   : > { %v868_v53 = vpop.f32.mrf.mxu1 }
 0x17e   : > { %1072 = vst [vmem:[%s2007_s22 + $0x38] sm:$0xff] %v979_v52  ;;  %v869_v54 = vadd.f32 %v868_v53, %v2003_v26 }
 0x17f   : > { %v701_v55 = vpop.f32.mrf.mxu0 }
 0x180   : > { %1073 = vst [vmem:[%s2007_s22 + $0x40] sm:$0xff] %v869_v54  ;;  %1374 = vmatmul.msk.f32.gmra.mxu1 %vm527_vm0, %v701_v55  ;;  %1406 = vmatmul.msk.f32.gmra.mxu2 %vm527_vm0, %v701_v55 }
 0x181   : > { %v937_v56 = vpop.f32.mrf.mxu3 }
 0x182   : > { %v938_v57 = vadd.f32 %v937_v56, %v2003_v26 }
 0x183   : > { %v981_v58 = vpop.f32.mrf.mxu2 }
 0x184   : > { %1119 = vst [vmem:[%s2007_s22 + $0x1b0] sm:$0xff] %v938_v57  ;;  %v982_v59 = vadd.f32 %v981_v58, %v2003_v26 }
 0x185   : > { %v871_v60 = vpop.f32.mrf.mxu1 }
 0x186   : > { %1074 = vst [vmem:[%s2007_s22 + $0x48] sm:$0xff] %v982_v59  ;;  %v872_v61 = vadd.f32 %v871_v60, %v2003_v26 }
 0x187   : > { %v704_v62 = vpop.f32.mrf.mxu0 }
 0x188   : > { %1075 = vst [vmem:[%s2007_s22 + $0x50] sm:$0xff] %v872_v61  ;;  %1375 = vmatmul.msk.f32.gmra.mxu1 %vm527_vm0, %v704_v62  ;;  %1407 = vmatmul.msk.f32.gmra.mxu2 %vm527_vm0, %v704_v62 }
 0x189   : > { %v940_v63 = vpop.f32.mrf.mxu3 }
 0x18a   : > { %v941_v0 = vadd.f32 %v940_v63, %v2003_v26 }
 0x18b   : > { %v984_v1 = vpop.f32.mrf.mxu2 }
 0x18c   : > { %1121 = vst [vmem:[%s2007_s22 + $0x1c0] sm:$0xff] %v941_v0  ;;  %v985_v2 = vadd.f32 %v984_v1, %v2003_v26 }
 0x18d   : > { %v874_v3 = vpop.f32.mrf.mxu1 }
 0x18e   : > { %1076 = vst [vmem:[%s2007_s22 + $0x58] sm:$0xff] %v985_v2  ;;  %v875_v4 = vadd.f32 %v874_v3, %v2003_v26 }
 0x18f   : > { %v707_v5 = vpop.f32.mrf.mxu0 }
 0x190   : > { %1077 = vst [vmem:[%s2007_s22 + $0x60] sm:$0xff] %v875_v4  ;;  %1376 = vmatmul.msk.f32.gmra.mxu1 %vm527_vm0, %v707_v5  ;;  %1408 = vmatmul.msk.f32.gmra.mxu2 %vm527_vm0, %v707_v5 }
 0x191   : > { %v943_v6 = vpop.f32.mrf.mxu3 }
 0x192   : > { %v944_v7 = vadd.f32 %v943_v6, %v2003_v26 }
 0x193   : > { %v987_v8 = vpop.f32.mrf.mxu2 }
 0x194   : > { %1123 = vst [vmem:[%s2007_s22 + $0x1d0] sm:$0xff] %v944_v7  ;;  %v988_v9 = vadd.f32 %v987_v8, %v2003_v26 }
 0x195   : > { %v877_v10 = vpop.f32.mrf.mxu1 }
 0x196   : > { %1078 = vst [vmem:[%s2007_s22 + $0x68] sm:$0xff] %v988_v9  ;;  %v878_v11 = vadd.f32 %v877_v10, %v2003_v26 }
 0x197   : > { %v710_v12 = vpop.f32.mrf.mxu0 }
 0x198   : > { %1079 = vst [vmem:[%s2007_s22 + $0x70] sm:$0xff] %v878_v11  ;;  %1377 = vmatmul.msk.f32.gmra.mxu1 %vm527_vm0, %v710_v12  ;;  %1409 = vmatmul.msk.f32.gmra.mxu2 %vm527_vm0, %v710_v12 }
 0x199   : > { %v946_v13 = vpop.f32.mrf.mxu3 }
 0x19a   : > { %v947_v14 = vadd.f32 %v946_v13, %v2003_v26 }
 0x19b   : > { %v990_v15 = vpop.f32.mrf.mxu2 }
 0x19c   : > { %1125 = vst [vmem:[%s2007_s22 + $0x1e0] sm:$0xff] %v947_v14  ;;  %v991_v16 = vadd.f32 %v990_v15, %v2003_v26 }
 0x19d   : > { %v880_v17 = vpop.f32.mrf.mxu1 }
 0x19e   : > { %1080 = vst [vmem:[%s2007_s22 + $0x78] sm:$0xff] %v991_v16  ;;  %v881_v18 = vadd.f32 %v880_v17, %v2003_v26 }
 0x1a0   : > { %1081 = vst [vmem:[%s2007_s22 + $0x80] sm:$0xff] %v881_v18 }
 0x1a1   : > { %v949_v19 = vpop.f32.mrf.mxu3 }
 0x1a2   : > { %v950_v20 = vadd.f32 %v949_v19, %v2003_v26 }
 0x1a3   : > { %v993_v21 = vpop.f32.mrf.mxu2 }
 0x1a4   : > { %1127 = vst [vmem:[%s2007_s22 + $0x1f0] sm:$0xff] %v950_v20  ;;  %v994_v22 = vadd.f32 %v993_v21, %v2003_v26 }
 0x1a5   : > { %v883_v23 = vpop.f32.mrf.mxu1 }
 0x1a6   : > { %1082 = vst [vmem:[%s2007_s22 + $0x88] sm:$0xff] %v994_v22  ;;  %v884_v24 = vadd.f32 %v883_v23, %v2003_v26 }
 0x1a8   : > { %1083 = vst [vmem:[%s2007_s22 + $0x90] sm:$0xff] %v884_v24 }
 0x1a9   : > { %v1041_v25 = vpop.f32.mrf.mxu3 }
 0x1aa   : > { %v1042_v27 = vadd.f32 %v1041_v25, %v2003_v26 }
 0x1ab   : > { %v996_v28 = vpop.f32.mrf.mxu2 }
 0x1ac   : > { %1114 = vst [vmem:[%s2007_s22 + $0x188] sm:$0xff] %v1042_v27  ;;  %v997_v29 = vadd.f32 %v996_v28, %v2003_v26 }
 0x1ad   : > { %v886_v30 = vpop.f32.mrf.mxu1 }
 0x1ae   : > { %1084 = vst [vmem:[%s2007_s22 + $0x98] sm:$0xff] %v997_v29  ;;  %v887_v31 = vadd.f32 %v886_v30, %v2003_v26 }
 0x1b0   : > { %1085 = vst [vmem:[%s2007_s22 + $0xa0] sm:$0xff] %v887_v31 }
 0x1b1   : > { %v1044_v32 = vpop.f32.mrf.mxu3 }
 0x1b2   : > { %v1045_v33 = vadd.f32 %v1044_v32, %v2003_v26 }
 0x1b3   : > { %v999_v34 = vpop.f32.mrf.mxu2 }
 0x1b4   : > { %1116 = vst [vmem:[%s2007_s22 + $0x198] sm:$0xff] %v1045_v33  ;;  %v1000_v35 = vadd.f32 %v999_v34, %v2003_v26 }
 0x1b5   : > { %v889_v36 = vpop.f32.mrf.mxu1 }
 0x1b6   : > { %1086 = vst [vmem:[%s2007_s22 + $0xa8] sm:$0xff] %v1000_v35  ;;  %v890_v37 = vadd.f32 %v889_v36, %v2003_v26 }
 0x1b8   : > { %1087 = vst [vmem:[%s2007_s22 + $0xb0] sm:$0xff] %v890_v37 }
 0x1b9   : > { %v1047_v38 = vpop.f32.mrf.mxu3 }
 0x1ba   : > { %v1048_v39 = vadd.f32 %v1047_v38, %v2003_v26 }
 0x1bb   : > { %v1002_v40 = vpop.f32.mrf.mxu2 }
 0x1bc   : > { %1118 = vst [vmem:[%s2007_s22 + $0x1a8] sm:$0xff] %v1048_v39  ;;  %v1003_v41 = vadd.f32 %v1002_v40, %v2003_v26 }
 0x1bd   : > { %v892_v42 = vpop.f32.mrf.mxu1 }
 0x1be   : > { %1088 = vst [vmem:[%s2007_s22 + $0xb8] sm:$0xff] %v1003_v41  ;;  %v893_v43 = vadd.f32 %v892_v42, %v2003_v26 }
 0x1c0   : > { %1089 = vst [vmem:[%s2007_s22 + $0xc0] sm:$0xff] %v893_v43 }
 0x1c1   : > { %v1050_v44 = vpop.f32.mrf.mxu3 }
 0x1c2   : > { %v1051_v45 = vadd.f32 %v1050_v44, %v2003_v26 }
 0x1c3   : > { %v1005_v46 = vpop.f32.mrf.mxu2 }
 0x1c4   : > { %1120 = vst [vmem:[%s2007_s22 + $0x1b8] sm:$0xff] %v1051_v45  ;;  %v1006_v47 = vadd.f32 %v1005_v46, %v2003_v26 }
 0x1c5   : > { %v895_v48 = vpop.f32.mrf.mxu1 }
 0x1c6   : > { %1090 = vst [vmem:[%s2007_s22 + $0xc8] sm:$0xff] %v1006_v47  ;;  %v896_v49 = vadd.f32 %v895_v48, %v2003_v26 }
 0x1c8   : > { %1091 = vst [vmem:[%s2007_s22 + $0xd0] sm:$0xff] %v896_v49 }
 0x1c9   : > { %v1053_v50 = vpop.f32.mrf.mxu3 }
 0x1ca   : > { %v1054_v51 = vadd.f32 %v1053_v50, %v2003_v26 }
 0x1cb   : > { %v1008_v52 = vpop.f32.mrf.mxu2 }
 0x1cc   : > { %1122 = vst [vmem:[%s2007_s22 + $0x1c8] sm:$0xff] %v1054_v51  ;;  %v1009_v53 = vadd.f32 %v1008_v52, %v2003_v26 }
 0x1cd   : > { %v898_v54 = vpop.f32.mrf.mxu1 }
 0x1ce   : > { %1092 = vst [vmem:[%s2007_s22 + $0xd8] sm:$0xff] %v1009_v53  ;;  %v899_v55 = vadd.f32 %v898_v54, %v2003_v26 }
 0x1d0   : > { %1093 = vst [vmem:[%s2007_s22 + $0xe0] sm:$0xff] %v899_v55 }
 0x1d1   : > { %v1056_v56 = vpop.f32.mrf.mxu3 }
 0x1d2   : > { %v1057_v57 = vadd.f32 %v1056_v56, %v2003_v26 }
 0x1d3   : > { %v1011_v58 = vpop.f32.mrf.mxu2 }
 0x1d4   : > { %1124 = vst [vmem:[%s2007_s22 + $0x1d8] sm:$0xff] %v1057_v57  ;;  %v1012_v59 = vadd.f32 %v1011_v58, %v2003_v26 }
 0x1d5   : > { %v901_v60 = vpop.f32.mrf.mxu1 }
 0x1d6   : > { %1094 = vst [vmem:[%s2007_s22 + $0xe8] sm:$0xff] %v1012_v59  ;;  %v902_v61 = vadd.f32 %v901_v60, %v2003_v26 }
 0x1d8   : > { %1095 = vst [vmem:[%s2007_s22 + $0xf0] sm:$0xff] %v902_v61 }
 0x1d9   : > { %v1059_v62 = vpop.f32.mrf.mxu3 }
 0x1da   : > { %v1060_v63 = vadd.f32 %v1059_v62, %v2003_v26 }
 0x1db   : > { %v1014_v0 = vpop.f32.mrf.mxu2 }
 0x1dc   : > { %1126 = vst [vmem:[%s2007_s22 + $0x1e8] sm:$0xff] %v1060_v63  ;;  %v1015_v1 = vadd.f32 %v1014_v0, %v2003_v26 }
 0x1dd   : > { %v904_v2 = vpop.f32.mrf.mxu1 }
 0x1de   : > { %1096 = vst [vmem:[%s2007_s22 + $0xf8] sm:$0xff] %v1015_v1  ;;  %v905_v3 = vadd.f32 %v904_v2, %v2003_v26 }
 0x1e0   : > { %1097 = vst [vmem:[%s2007_s22 + $0x100] sm:$0xff] %v905_v3 }
 0x1e1   : > { %v1062_v4 = vpop.f32.mrf.mxu3 }
 0x1e2   : > { %v1063_v5 = vadd.f32 %v1062_v4, %v2003_v26 }
 0x1e3   : > { %v1017_v6 = vpop.f32.mrf.mxu2 }
 0x1e4   : > { %1128 = vst [vmem:[%s2007_s22 + $0x1f8] sm:$0xff] %v1063_v5  ;;  %v1018_v7 = vadd.f32 %v1017_v6, %v2003_v26 }
 0x1e5   : > { %v907_v8 = vpop.f32.mrf.mxu1 }
 0x1e6   : > { %1098 = vst [vmem:[%s2007_s22 + $0x108] sm:$0xff] %v1018_v7  ;;  %v908_v9 = vadd.f32 %v907_v8, %v2003_v26 }
 0x1e8   : > { %1099 = vst [vmem:[%s2007_s22 + $0x110] sm:$0xff] %v908_v9 }
 0x1eb   : > { %v1020_v10 = vpop.f32.mrf.mxu2 }
 0x1ec   : > { %v1021_v11 = vadd.f32 %v1020_v10, %v2003_v26 }
 0x1ed   : > { %v910_v12 = vpop.f32.mrf.mxu1 }
 0x1ee   : > { %1100 = vst [vmem:[%s2007_s22 + $0x118] sm:$0xff] %v1021_v11  ;;  %v911_v13 = vadd.f32 %v910_v12, %v2003_v26 }
 0x1f0   : > { %1101 = vst [vmem:[%s2007_s22 + $0x120] sm:$0xff] %v911_v13 }
 0x1f3   : > { %v1023_v14 = vpop.f32.mrf.mxu2 }
 0x1f4   : > { %v1024_v15 = vadd.f32 %v1023_v14, %v2003_v26 }
 0x1f5   : > { %v913_v16 = vpop.f32.mrf.mxu1 }
 0x1f6   : > { %1102 = vst [vmem:[%s2007_s22 + $0x128] sm:$0xff] %v1024_v15  ;;  %v914_v17 = vadd.f32 %v913_v16, %v2003_v26 }
 0x1f8   : > { %1103 = vst [vmem:[%s2007_s22 + $0x130] sm:$0xff] %v914_v17 }
 0x1fb   : > { %v1026_v18 = vpop.f32.mrf.mxu2 }
 0x1fc   : > { %v1027_v19 = vadd.f32 %v1026_v18, %v2003_v26 }
 0x1fd   : > { %v916_v20 = vpop.f32.mrf.mxu1 }
 0x1fe   : > { %1104 = vst [vmem:[%s2007_s22 + $0x138] sm:$0xff] %v1027_v19  ;;  %v917_v21 = vadd.f32 %v916_v20, %v2003_v26 }
 0x200   : > { %1105 = vst [vmem:[%s2007_s22 + $0x140] sm:$0xff] %v917_v21 }
 0x203   : > { %v1029_v22 = vpop.f32.mrf.mxu2 }
 0x204   : > { %v1030_v23 = vadd.f32 %v1029_v22, %v2003_v26 }
 0x205   : > { %v919_v24 = vpop.f32.mrf.mxu1 }
 0x206   : > { %1106 = vst [vmem:[%s2007_s22 + $0x148] sm:$0xff] %v1030_v23  ;;  %v920_v25 = vadd.f32 %v919_v24, %v2003_v26 }
 0x208   : > { %1107 = vst [vmem:[%s2007_s22 + $0x150] sm:$0xff] %v920_v25 }
 0x20b   : > { %v1032_v27 = vpop.f32.mrf.mxu2 }
 0x20c   : > { %v1033_v28 = vadd.f32 %v1032_v27, %v2003_v26 }
 0x20d   : > { %v922_v29 = vpop.f32.mrf.mxu1 }
 0x20e   : > { %1108 = vst [vmem:[%s2007_s22 + $0x158] sm:$0xff] %v1033_v28  ;;  %v923_v30 = vadd.f32 %v922_v29, %v2003_v26 }
 0x210   : > { %1109 = vst [vmem:[%s2007_s22 + $0x160] sm:$0xff] %v923_v30 }
 0x213   : > { %v1035_v31 = vpop.f32.mrf.mxu2 }
 0x214   : > { %v1036_v32 = vadd.f32 %v1035_v31, %v2003_v26 }
 0x215   : > { %v925_v33 = vpop.f32.mrf.mxu1 }
 0x216   : > { %1110 = vst [vmem:[%s2007_s22 + $0x168] sm:$0xff] %v1036_v32  ;;  %v926_v34 = vadd.f32 %v925_v33, %v2003_v26 }
 0x218   : > { %1111 = vst [vmem:[%s2007_s22 + $0x170] sm:$0xff] %v926_v34 }
 0x21b   : > { %v1038_v35 = vpop.f32.mrf.mxu2 }
 0x21c   : > { %v1039_v36 = vadd.f32 %v1038_v35, %v2003_v26 }
 0x21e   : > { %1112 = vst [vmem:[%s2007_s22 + $0x178] sm:$0xff] %v1039_v36 }
 0x21f   : > { %1525 = shalt.err (!%p1522_p8)
}
 0x220   : > { %s1567_s13 = smov 256   ;;  %s1568_s14 = smov 16  }
 0x221   : > { %1435 = dma.vmem_to_hbm [thread:$0]  (%p1632_p5), %s1143_s30, 8192, %s1145_s5, %s1130_s19, %s1567_s13, %s1567_s13, %s1568_s14  }
 0x222 PF: > { %p1447_p9 = scmp.ge.s32.totalorder %s1564_s18, 2  ;;  %s1159_s20 = sand.u32 1, %s1552_s15  }
 0x223   : > { %s1160_s22 = scalar_lea.sflag [#allocation3], %s1159_s20 }
 0x224   : > { %p1442_p10 = pnand %p1447_p9, %p1636_p6 }
 0x226   : > { %p1443_p11 = pneg %p1442_p10 }
 0x228   : > { %1547 = dma.done.wait (%p1443_p11), %s1160_s22, 8192  }
 0x229   : > { %1549 = vsyncadd (%p1443_p11), %s1160_s22, 4294959104  ;;  %p15_p12 = scmp.ge.s32.totalorder %s1619_s21, 4   ;;  %s2193_s15 = smov %s1556_s16 }
 0x22a   : > { %s2194_s16 = smov %s1560_s17  ;;  %s2195_s17 = smov %s1630_s24 }
 0x22b   : > { %s2196_s18 = smov %s1619_s21  ;;  %17 = sbr.rel (!%p15_p12) target bundleno = 4 (0x4), region = 107 }
 0x230   :  { %1166 = vsyncpa [#allocation3], 1 }
 0x231   :  { %1168 = vsyncpa [#allocation3 + $0x1], 1 }
 0x232   :  { %1169 = vsyncpa [#allocation4], 1 }
 0x233   :  { %1171 = vsyncpa [#allocation4 + $0x1], 1 }

</bundles_post_ra>
